<compile_context>
chip_gen: v6e
topology: v6e:2x2x1
jax: 0.10.0
libtpu: 0.0.40
codegen_flags: <defaults>
</compile_context>

<pallas_src>
import functools

import jax
import jax.numpy as jnp
from jax.experimental import pallas as pl
from jax.experimental.pallas import tpu as pltpu

INPUT_SIZE = 28 * 28          # 784
HIDDEN = 256
LATENT = 64


def _round_up(n, m):
    return ((n + m - 1) // m) * m


def _choose_tb(batch):
    """Batch tile: multiple of 16 (bf16-friendly), <=512, and >=2 grid steps when possible."""
    b = _round_up(batch, 16)
    if b <= 32:
        return b                      # tiny demo batches: single tile
    # keep at least 2 grid steps (v7x megacore sharding) while amortizing per-step overhead
    return min(512, _round_up(pl.cdiv(b, 2), 16))


def autoencoder_kernel(x_ref,
                       w1_ref, b1_ref,   # encoder Linear(784 -> 256)
                       w2_ref, b2_ref,   # encoder Linear(256 -> 64)
                       w3_ref, b3_ref,   # decoder Linear(64 -> 256)
                       w4_ref, b4_ref,   # decoder Linear(256 -> 784)
                       recon_ref, latent_ref):
    # bf16 cast happens here in VMEM (input arrives as raw f32 rows of the flattened image)
    x = x_ref[...].astype(jnp.bfloat16)                       # (TB, 784)

    # ---- encoder ----
    h1 = jnp.dot(x, w1_ref[...],
                 preferred_element_type=jnp.float32) + b1_ref[...]
    h1 = jnp.maximum(h1, 0.0)                                 # ReLU (f32)
    latent = jnp.dot(h1.astype(jnp.bfloat16), w2_ref[...],
                     preferred_element_type=jnp.float32) + b2_ref[...]

    # ---- decoder ----
    h2 = jnp.dot(latent.astype(jnp.bfloat16), w3_ref[...],
                 preferred_element_type=jnp.float32) + b3_ref[...]
    h2 = jnp.maximum(h2, 0.0)                                 # ReLU (f32)
    logits = jnp.dot(h2.astype(jnp.bfloat16), w4_ref[...],
                     preferred_element_type=jnp.float32) + b4_ref[...]

    latent_ref[...] = latent                                  # (TB, 64)  f32
    recon_ref[...] = jax.nn.sigmoid(logits)                   # (TB, 784) f32 (EUP)


def prepare_params(params):
    """One-time parameter prep: cast weights to bf16 (MXU-native); biases stay f32 (1, out)."""
    (w1, b1), (w2, b2), (w3, b3), (w4, b4) = params
    c = lambda w: w.astype(jnp.bfloat16)
    return ((c(w1), b1), (c(w2), b2), (c(w3), b3), (c(w4), b4))


@functools.partial(jax.jit, static_argnames=("tb",))
def autoencoder_forward(x, params, tb=None):
    """x: (B, 1, 28, 28) f32 -> (reconstructed (B,1,28,28) f32, latent (B,64) f32)."""
    (w1, b1), (w2, b2), (w3, b3), (w4, b4) = params
    # trace-time fallback if caller didn't run prepare_params()
    if w1.dtype != jnp.bfloat16:
        (w1, b1), (w2, b2), (w3, b3), (w4, b4) = prepare_params(
            ((w1, b1), (w2, b2), (w3, b3), (w4, b4)))

    B = x.shape[0]
    TB = _choose_tb(B) if tb is None else tb
    assert TB % 16 == 0 or TB == B, "batch tile should be a multiple of 16"

    B_pad = _round_up(B, TB)
    grid = (B_pad // TB,)

    x_flat = x.reshape(B, INPUT_SIZE)                         # nn.Flatten()
    if B_pad != B:                                            # only pad when not tile-aligned
        x_flat = jnp.pad(x_flat, ((0, B_pad - B), (0, 0)))

    full = lambda i: (0, 0)       # constant index_map -> weights stay VMEM-resident
    row = lambda i: (i, 0)        # batch-tiled arrays

    # Advisory cost estimate so XLA schedules/overlaps the custom call sensibly.
    flops = 2 * B_pad * (INPUT_SIZE * HIDDEN + HIDDEN * LATENT
                         + LATENT * HIDDEN + HIDDEN * INPUT_SIZE)
    transcendentals = B_pad * INPUT_SIZE                      # sigmoid exp
    bytes_accessed = (
        B_pad * INPUT_SIZE * 4                                # x (f32)
        + 2 * (INPUT_SIZE * HIDDEN + HIDDEN * LATENT
               + LATENT * HIDDEN + HIDDEN * INPUT_SIZE)       # weights (bf16)
        + 4 * (HIDDEN + LATENT + HIDDEN + INPUT_SIZE)         # biases (f32)
        + B_pad * INPUT_SIZE * 4 + B_pad * LATENT * 4         # recon + latent (f32)
    )
    cost = pl.CostEstimate(flops=flops, transcendentals=transcendentals,
                           bytes_accessed=bytes_accessed)

    recon_p, latent_p = pl.pallas_call(
        autoencoder_kernel,
        out_shape=(
            jax.ShapeDtypeStruct((B_pad, INPUT_SIZE), jnp.float32),
            jax.ShapeDtypeStruct((B_pad, LATENT), jnp.float32),
        ),
        grid_spec=pltpu.PrefetchScalarGridSpec(
            num_scalar_prefetch=0,
            grid=grid,
            in_specs=[
                pl.BlockSpec((TB, INPUT_SIZE), row),          # x tile (raw f32, full last dim)
                pl.BlockSpec((INPUT_SIZE, HIDDEN), full),     # w1
                pl.BlockSpec((1, HIDDEN), full),              # b1
                pl.BlockSpec((HIDDEN, LATENT), full),         # w2
                pl.BlockSpec((1, LATENT), full),              # b2
                pl.BlockSpec((LATENT, HIDDEN), full),         # w3
                pl.BlockSpec((1, HIDDEN), full),              # b3
                pl.BlockSpec((HIDDEN, INPUT_SIZE), full),     # w4
                pl.BlockSpec((1, INPUT_SIZE), full),          # b4
            ],
            out_specs=[
                pl.BlockSpec((TB, INPUT_SIZE), row),          # reconstructed (784-wide, f32)
                pl.BlockSpec((TB, LATENT), row),              # latent (64-wide, f32)
            ],
        ),
        compiler_params=pltpu.CompilerParams(
            dimension_semantics=("parallel",),   # batch tiles shard across v7x's 2 TCs
        ),
        cost_estimate=cost,
    )(x_flat, w1, b1, w2, b2, w3, b3, w4, b4)

    # Row-only slice: a no-op when B is tile-aligned; never a full feature-dim repack.
    reconstructed = recon_p[:B].reshape(-1, 1, 28, 28)
    latent = latent_p[:B]
    return reconstructed, latent


def init_params(key):
    """Deterministic init; weights stored as (in_dim, out_dim), biases as (1, out_dim)."""
    def linear(key, fan_in, fan_out):
        kw, kb = jax.random.split(key)
        bound = 1.0 / jnp.sqrt(fan_in)
        w = jax.random.uniform(kw, (fan_in, fan_out), jnp.float32, -bound, bound)
        b = jax.random.uniform(kb, (1, fan_out), jnp.float32, -bound, bound)
        return w, b

    k1, k2, k3, k4 = jax.random.split(key, 4)
    return (
        linear(k1, INPUT_SIZE, HIDDEN),   # encoder Linear(784, 256)
        linear(k2, HIDDEN, LATENT),       # encoder Linear(256, 64)
        linear(k3, LATENT, HIDDEN),       # decoder Linear(64, 256)
        linear(k4, HIDDEN, INPUT_SIZE),   # decoder Linear(256, 784)
    )


def reference_forward(x, params):
    """Plain-JAX f32 reference with PyTorch forward semantics."""
    (w1, b1), (w2, b2), (w3, b3), (w4, b4) = params
    xf = x.reshape(x.shape[0], INPUT_SIZE)
    h1 = jnp.maximum(xf @ w1 + b1, 0.0)
    latent = h1 @ w2 + b2
    h2 = jnp.maximum(latent @ w3 + b3, 0.0)
    recon = jax.nn.sigmoid(h2 @ w4 + b4)
    return recon.reshape(-1, 1, 28, 28), latent


if __name__ == "__main__":
    key = jax.random.PRNGKey(0)
    kx, kp, kx2 = jax.random.split(key, 3)
    params = init_params(kp)
    prepped = prepare_params(params)          # one-time weight bf16 cast (hoisted out of forward)

    # bf16 matmul inputs with f32 accumulation -> loosened tolerance vs f32 reference.
    TOL = dict(atol=2e-2, rtol=2e-2)

    # --- small demo batch (single tile, tile-aligned -> no batch padding, no output slice) ---
    B = 32
    x = jax.random.uniform(kx, (B, 1, 28, 28), jnp.float32)
    reconstructed, latent = autoencoder_forward(x, prepped)
    jax.block_until_ready((reconstructed, latent))
    ref_recon, ref_latent = reference_forward(x, params)
    assert reconstructed.shape == (B, 1, 28, 28)
    assert latent.shape == (B, LATENT)
    assert jnp.allclose(reconstructed, ref_recon, **TOL)
    assert jnp.allclose(latent, ref_latent, **TOL)

    # --- exercise batch padding + multi-step grid (B=48 -> TB=32, pad to 64, grid=(2,)) ---
    B2 = 48
    x2 = jax.random.uniform(kx2, (B2, 1, 28, 28), jnp.float32)
    recon2, latent2 = autoencoder_forward(x2, prepped)
    jax.block_until_ready((recon2, latent2))
    ref_recon2, ref_latent2 = reference_forward(x2, params)
    assert recon2.shape == (B2, 1, 28, 28)
    assert latent2.shape == (B2, LATENT)
    assert jnp.allclose(recon2, ref_recon2, **TOL)
    assert jnp.allclose(latent2, ref_latent2, **TOL)

    print("KERNEL_OK")
</pallas_src>

<mosaic_0001>
module attributes {stable_mosaic.version = 11 : i64} {
  func.func @autoencoder_kernel(%arg0: i32, %arg1: memref<32x784xf32, #tpu.memory_space<vmem>>, %arg2: memref<784x256xbf16, #tpu.memory_space<vmem>>, %arg3: memref<1x256xf32, #tpu.memory_space<vmem>>, %arg4: memref<256x64xbf16, #tpu.memory_space<vmem>>, %arg5: memref<1x64xf32, #tpu.memory_space<vmem>>, %arg6: memref<64x256xbf16, #tpu.memory_space<vmem>>, %arg7: memref<1x256xf32, #tpu.memory_space<vmem>>, %arg8: memref<256x784xbf16, #tpu.memory_space<vmem>>, %arg9: memref<1x784xf32, #tpu.memory_space<vmem>>, %arg10: memref<32x784xf32, #tpu.memory_space<vmem>>, %arg11: memref<32x64xf32, #tpu.memory_space<vmem>>) attributes {dimension_semantics = [#tpu.dimension_semantics<parallel>], iteration_bounds = array<i64: 1>, scalar_prefetch = 0 : i64, scratch_operands = 0 : i64, tpu.core_type = #tpu.core_type<tc>, window_params = [{transform_indices = @transform_0, window_bounds = array<i64: 32, 784>}, {pipeline_mode = #tpu.pipeline_mode<synchronous>, transform_indices = @transform_1, window_bounds = array<i64: 784, 256>}, {pipeline_mode = #tpu.pipeline_mode<synchronous>, transform_indices = @transform_2, window_bounds = array<i64: 1, 256>}, {pipeline_mode = #tpu.pipeline_mode<synchronous>, transform_indices = @transform_3, window_bounds = array<i64: 256, 64>}, {pipeline_mode = #tpu.pipeline_mode<synchronous>, transform_indices = @transform_4, window_bounds = array<i64: 1, 64>}, {pipeline_mode = #tpu.pipeline_mode<synchronous>, transform_indices = @transform_5, window_bounds = array<i64: 64, 256>}, {pipeline_mode = #tpu.pipeline_mode<synchronous>, transform_indices = @transform_6, window_bounds = array<i64: 1, 256>}, {pipeline_mode = #tpu.pipeline_mode<synchronous>, transform_indices = @transform_7, window_bounds = array<i64: 256, 784>}, {pipeline_mode = #tpu.pipeline_mode<synchronous>, transform_indices = @transform_8, window_bounds = array<i64: 1, 784>}, {transform_indices = @transform_9, window_bounds = array<i64: 32, 784>}, {transform_indices = @transform_10, window_bounds = array<i64: 32, 64>}]} {
    %c0 = arith.constant 0 : index
    %c0_0 = arith.constant 0 : index
    %0 = vector.load %arg1[%c0, %c0_0] : memref<32x784xf32, #tpu.memory_space<vmem>>, vector<32x784xf32>
    %1 = arith.truncf %0 : vector<32x784xf32> to vector<32x784xbf16>
    %c0_1 = arith.constant 0 : index
    %c0_2 = arith.constant 0 : index
    %2 = vector.load %arg2[%c0_1, %c0_2] : memref<784x256xbf16, #tpu.memory_space<vmem>>, vector<784x256xbf16>
    %cst = arith.constant dense<0.000000e+00> : vector<32x256xf32>
    %3 = tpu.matmul %1, %2, %cst {dimension_numbers = #tpu.dot_dimension_numbers<[1], [0], [0], [1], [0, 0, 1, 1], [], []>} : vector<32x784xbf16>, vector<784x256xbf16>, vector<32x256xf32> -> vector<32x256xf32>
    %c0_3 = arith.constant 0 : index
    %c0_4 = arith.constant 0 : index
    %4 = vector.load %arg3[%c0_3, %c0_4] : memref<1x256xf32, #tpu.memory_space<vmem>>, vector<1x256xf32>
    %5 = vector.broadcast %4 : vector<1x256xf32> to vector<32x256xf32>
    %6 = arith.addf %3, %5 : vector<32x256xf32>
    %cst_5 = arith.constant 0.000000e+00 : f32
    %7 = vector.broadcast %cst_5 : f32 to vector<32x256xf32>
    %8 = arith.maximumf %6, %7 : vector<32x256xf32>
    %9 = arith.truncf %8 : vector<32x256xf32> to vector<32x256xbf16>
    %c0_6 = arith.constant 0 : index
    %c0_7 = arith.constant 0 : index
    %10 = vector.load %arg4[%c0_6, %c0_7] : memref<256x64xbf16, #tpu.memory_space<vmem>>, vector<256x64xbf16>
    %cst_8 = arith.constant dense<0.000000e+00> : vector<32x64xf32>
    %11 = tpu.matmul %9, %10, %cst_8 {dimension_numbers = #tpu.dot_dimension_numbers<[1], [0], [0], [1], [0, 0, 1, 1], [], []>} : vector<32x256xbf16>, vector<256x64xbf16>, vector<32x64xf32> -> vector<32x64xf32>
    %c0_9 = arith.constant 0 : index
    %c0_10 = arith.constant 0 : index
    %12 = vector.load %arg5[%c0_9, %c0_10] : memref<1x64xf32, #tpu.memory_space<vmem>>, vector<1x64xf32>
    %13 = vector.broadcast %12 : vector<1x64xf32> to vector<32x64xf32>
    %14 = arith.addf %11, %13 : vector<32x64xf32>
    %15 = arith.truncf %14 : vector<32x64xf32> to vector<32x64xbf16>
    %c0_11 = arith.constant 0 : index
    %c0_12 = arith.constant 0 : index
    %16 = vector.load %arg6[%c0_11, %c0_12] : memref<64x256xbf16, #tpu.memory_space<vmem>>, vector<64x256xbf16>
    %cst_13 = arith.constant dense<0.000000e+00> : vector<32x256xf32>
    %17 = tpu.matmul %15, %16, %cst_13 {dimension_numbers = #tpu.dot_dimension_numbers<[1], [0], [0], [1], [0, 0, 1, 1], [], []>} : vector<32x64xbf16>, vector<64x256xbf16>, vector<32x256xf32> -> vector<32x256xf32>
    %c0_14 = arith.constant 0 : index
    %c0_15 = arith.constant 0 : index
    %18 = vector.load %arg7[%c0_14, %c0_15] : memref<1x256xf32, #tpu.memory_space<vmem>>, vector<1x256xf32>
    %19 = vector.broadcast %18 : vector<1x256xf32> to vector<32x256xf32>
    %20 = arith.addf %17, %19 : vector<32x256xf32>
    %cst_16 = arith.constant 0.000000e+00 : f32
    %21 = vector.broadcast %cst_16 : f32 to vector<32x256xf32>
    %22 = arith.maximumf %20, %21 : vector<32x256xf32>
    %23 = arith.truncf %22 : vector<32x256xf32> to vector<32x256xbf16>
    %c0_17 = arith.constant 0 : index
    %c0_18 = arith.constant 0 : index
    %24 = vector.load %arg8[%c0_17, %c0_18] : memref<256x784xbf16, #tpu.memory_space<vmem>>, vector<256x784xbf16>
    %cst_19 = arith.constant dense<0.000000e+00> : vector<32x784xf32>
    %25 = tpu.matmul %23, %24, %cst_19 {dimension_numbers = #tpu.dot_dimension_numbers<[1], [0], [0], [1], [0, 0, 1, 1], [], []>} : vector<32x256xbf16>, vector<256x784xbf16>, vector<32x784xf32> -> vector<32x784xf32>
    %c0_20 = arith.constant 0 : index
    %c0_21 = arith.constant 0 : index
    %26 = vector.load %arg9[%c0_20, %c0_21] : memref<1x784xf32, #tpu.memory_space<vmem>>, vector<1x784xf32>
    %27 = vector.broadcast %26 : vector<1x784xf32> to vector<32x784xf32>
    %28 = arith.addf %25, %27 : vector<32x784xf32>
    %c0_22 = arith.constant 0 : index
    %c0_23 = arith.constant 0 : index
    %29 = vector.load %arg11[%c0_22, %c0_23] : memref<32x64xf32, #tpu.memory_space<vmem>>, vector<32x64xf32>
    tpu.vector_store %arg11[%c0_22, %c0_23], %14 {strides = array<i32>} : memref<32x64xf32, #tpu.memory_space<vmem>>, vector<32x64xf32>,
    %30 = arith.negf %28 : vector<32x784xf32>
    %31 = math.exp %30 : vector<32x784xf32>
    %cst_24 = arith.constant 1.000000e+00 : f32
    %32 = vector.broadcast %cst_24 : f32 to vector<32x784xf32>
    %33 = arith.addf %32, %31 : vector<32x784xf32>
    %34 = arith.divf %32, %33 : vector<32x784xf32>
    %c0_25 = arith.constant 0 : index
    %c0_26 = arith.constant 0 : index
    %35 = vector.load %arg10[%c0_25, %c0_26] : memref<32x784xf32, #tpu.memory_space<vmem>>, vector<32x784xf32>
    tpu.vector_store %arg10[%c0_25, %c0_26], %34 {strides = array<i32>} : memref<32x784xf32, #tpu.memory_space<vmem>>, vector<32x784xf32>,
    return
  }
  func.func @transform_0(%arg0: i32) -> (i32, i32) {
    %c0_i32 = arith.constant 0 : i32
    %c0_i32_0 = arith.constant 0 : i32
    return %arg0, %c0_i32 : i32, i32
  }
  func.func @transform_1(%arg0: i32) -> (i32, i32) {
    %c0_i32 = arith.constant 0 : i32
    %c0_i32_0 = arith.constant 0 : i32
    %c0_i32_1 = arith.constant 0 : i32
    return %c0_i32, %c0_i32_0 : i32, i32
  }
  func.func @transform_2(%arg0: i32) -> (i32, i32) {
    %c0_i32 = arith.constant 0 : i32
    %c0_i32_0 = arith.constant 0 : i32
    %c0_i32_1 = arith.constant 0 : i32
    return %c0_i32, %c0_i32_0 : i32, i32
  }
  func.func @transform_3(%arg0: i32) -> (i32, i32) {
    %c0_i32 = arith.constant 0 : i32
    %c0_i32_0 = arith.constant 0 : i32
    %c0_i32_1 = arith.constant 0 : i32
    return %c0_i32, %c0_i32_0 : i32, i32
  }
  func.func @transform_4(%arg0: i32) -> (i32, i32) {
    %c0_i32 = arith.constant 0 : i32
    %c0_i32_0 = arith.constant 0 : i32
    %c0_i32_1 = arith.constant 0 : i32
    return %c0_i32, %c0_i32_0 : i32, i32
  }
  func.func @transform_5(%arg0: i32) -> (i32, i32) {
    %c0_i32 = arith.constant 0 : i32
    %c0_i32_0 = arith.constant 0 : i32
    %c0_i32_1 = arith.constant 0 : i32
    return %c0_i32, %c0_i32_0 : i32, i32
  }
  func.func @transform_6(%arg0: i32) -> (i32, i32) {
    %c0_i32 = arith.constant 0 : i32
    %c0_i32_0 = arith.constant 0 : i32
    %c0_i32_1 = arith.constant 0 : i32
    return %c0_i32, %c0_i32_0 : i32, i32
  }
  func.func @transform_7(%arg0: i32) -> (i32, i32) {
    %c0_i32 = arith.constant 0 : i32
    %c0_i32_0 = arith.constant 0 : i32
    %c0_i32_1 = arith.constant 0 : i32
    return %c0_i32, %c0_i32_0 : i32, i32
  }
  func.func @transform_8(%arg0: i32) -> (i32, i32) {
    %c0_i32 = arith.constant 0 : i32
    %c0_i32_0 = arith.constant 0 : i32
    %c0_i32_1 = arith.constant 0 : i32
    return %c0_i32, %c0_i32_0 : i32, i32
  }
  func.func @transform_9(%arg0: i32) -> (i32, i32) {
    %c0_i32 = arith.constant 0 : i32
    %c0_i32_0 = arith.constant 0 : i32
    return %arg0, %c0_i32 : i32, i32
  }
  func.func @transform_10(%arg0: i32) -> (i32, i32) {
    %c0_i32 = arith.constant 0 : i32
    %c0_i32_0 = arith.constant 0 : i32
    return %arg0, %c0_i32 : i32, i32
  }
}

</mosaic_0001>

<bundles_post_ra>
// kernel: autoencoder_forward.1
= control target key start
LH: loop header
LB: loop body
LE: loop exit
PB: predicated region body
PF: predicated region fallthrough
CT: control target
= control target key end

     0   :  { %vm678_vm0 = vcmask 130048   ;;  %s4198_s0 = inlined_call_operand.vmem [shape: f32[32,784], index: 0, kind: input, shape index: {}]   ;;  %s4199_s1 = inlined_call_operand.vmem [shape: bf16[784,256], index: 1, kind: input, shape index: {}]   ;;  %s4200_s2 = inlined_call_operand.vmem [shape: f32[1,256], index: 2, kind: input, shape index: {}]   ;;  %s4201_s3 = inlined_call_operand.vmem [shape: bf16[256,64], index: 3, kind: input, shape index: {}]   ;;  %s4202_s4 = inlined_call_operand.vmem [shape: f32[1,64], index: 4, kind: input, shape index: {}]   ;;  %s4203_s5 = inlined_call_operand.vmem [shape: bf16[64,256], index: 5, kind: input, shape index: {}]   ;;  %s4204_s6 = inlined_call_operand.vmem [shape: f32[1,256], index: 6, kind: input, shape index: {}]   ;;  %s4205_s7 = inlined_call_operand.vmem [shape: bf16[256,784], index: 7, kind: input, shape index: {}]   ;;  %s4206_s8 = inlined_call_operand.vmem [shape: f32[1,784], index: 8, kind: input, shape index: {}]   ;;  %s4207_s9 = inlined_call_operand.vmem [shape: f32[32,784], index: 9, kind: output, shape index: {0}]   ;;  %s4208_s10 = inlined_call_operand.hbm [shape: f32[32,64], index: 10, kind: output, shape index: {1}]  }
   0x1   :  { %v2723_v0 = vld [vmem:[%s4199_s1 + $0x74] ss:$8 sps:$4 sm:$0xff]   ;;  %v2725_v1 = vld [vmem:[%s4199_s1 + $0x70] ss:$8 sps:$4 sm:$0xff]   ;;  %v2729_v4 = vld [vmem:[%s4199_s1 + $0x64] ss:$8 sps:$4 sm:$0xff]  }
   0x2   :  { %685 = vmatprep.subr.bf16.mxu0 %v2723_v0  ;;  %v2726_v2 = vld [vmem:[%s4199_s1 + $0x174] ss:$8 sps:$4 sm:$0xff]   ;;  %v2728_v3 = vld [vmem:[%s4199_s1 + $0x170] ss:$8 sps:$4 sm:$0xff]   ;;  %v2731_v5 = vld [vmem:[%s4199_s1 + $0x60] ss:$8 sps:$4 sm:$0xff]  }
   0x3   :  { %686 = vmatpush1.bf16.msra.mxu0 %v2725_v1  ;;  %738 = vmatprep.subr.bf16.mxu1 %v2726_v2  ;;  %v2732_v6 = vld [vmem:[%s4199_s1 + $0x164] ss:$8 sps:$4 sm:$0xff]   ;;  %v2734_v7 = vld [vmem:[%s4199_s1 + $0x160] ss:$8 sps:$4 sm:$0xff]   ;;  %v2735_v8 = vld [vmem:[%s4199_s1 + $0x54] ss:$8 sps:$4 sm:$0xff]  }
   0x4   :  { %739 = vmatpush1.bf16.msra.mxu1 %v2728_v3  ;;  %687 = vmatprep.subr.bf16.mxu0 %v2729_v4  ;;  %v2737_v9 = vld [vmem:[%s4199_s1 + $0x50] ss:$8 sps:$4 sm:$0xff]   ;;  %v2738_v10 = vld [vmem:[%s4199_s1 + $0x154] ss:$8 sps:$4 sm:$0xff]   ;;  %v2741_v11 = vld [vmem:[%s4199_s1 + $0x44] ss:$8 sps:$4 sm:$0xff]  }
   0x5   :  { %740 = vmatprep.subr.bf16.mxu1 %v2732_v6  ;;  %v2740_v12 = vld [vmem:[%s4199_s1 + $0x150] ss:$8 sps:$4 sm:$0xff]   ;;  %v2744_v13 = vld [vmem:[%s4199_s1 + $0x144] ss:$8 sps:$4 sm:$0xff]   ;;  %v2743_v14 = vld [vmem:[%s4199_s1 + $0x40] ss:$8 sps:$4 sm:$0xff]  }
   0x6   :  { %v2747_v15 = vld [vmem:[%s4199_s1 + $0x34] ss:$8 sps:$4 sm:$0xff]   ;;  %v2746_v16 = vld [vmem:[%s4199_s1 + $0x140] ss:$8 sps:$4 sm:$0xff]   ;;  %v2749_v18 = vld [vmem:[%s4199_s1 + $0x30] ss:$8 sps:$4 sm:$0xff]  }
   0x7   :  { %688 = vmatpush1.bf16.msra.mxu0 %v2731_v5  ;;  %v2750_v17 = vld [vmem:[%s4199_s1 + $0x134] ss:$8 sps:$4 sm:$0xff]   ;;  %v2753_v19 = vld [vmem:[%s4199_s1 + $0x24] ss:$8 sps:$4 sm:$0xff]   ;;  %v2752_v20 = vld [vmem:[%s4199_s1 + $0x130] ss:$8 sps:$4 sm:$0xff]  }
   0x8   :  { %689 = vmatprep.subr.bf16.mxu0 %v2735_v8  ;;  %741 = vmatpush1.bf16.msra.mxu1 %v2734_v7  ;;  %v2756_v21 = vld [vmem:[%s4199_s1 + $0x124] ss:$8 sps:$4 sm:$0xff]   ;;  %v2755_v22 = vld [vmem:[%s4199_s1 + $0x20] ss:$8 sps:$4 sm:$0xff]   ;;  %v2759_v23 = vld [vmem:[%s4199_s1 + $0x14] ss:$8 sps:$4 sm:$0xff]  }
   0x9   :  { %742 = vmatprep.subr.bf16.mxu1 %v2738_v10  ;;  %v2758_v24 = vld [vmem:[%s4199_s1 + $0x120] ss:$8 sps:$4 sm:$0xff]   ;;  %v2762_v25 = vld [vmem:[%s4199_s1 + $0x114] ss:$8 sps:$4 sm:$0xff]   ;;  %v2761_v26 = vld [vmem:[%s4199_s1 + $0x10] ss:$8 sps:$4 sm:$0xff]  }
   0xa   :  { %v2765_v27 = vld [vmem:[%s4199_s1 + $0x4] ss:$8 sps:$4 sm:$0xff]   ;;  %v2764_v28 = vld [vmem:[%s4199_s1 + $0x110] ss:$8 sps:$4 sm:$0xff]   ;;  %v2767_v30 = vld [vmem:[%s4199_s1] ss:$8 sps:$4 sm:$0xff]  }
   0xb   :  { %690 = vmatpush1.bf16.msra.mxu0 %v2737_v9  ;;  %v2768_v29 = vld [vmem:[%s4199_s1 + $0x104] ss:$8 sps:$4 sm:$0xff]   ;;  %v2771_v31 = vld [vmem:[%s4199_s1 + $0xf4] ss:$8 sps:$4 sm:$0xff]   ;;  %v2770_v32 = vld [vmem:[%s4199_s1 + $0x100] ss:$8 sps:$4 sm:$0xff]  }
   0xc   :  { %691 = vmatprep.subr.bf16.mxu0 %v2741_v11  ;;  %743 = vmatpush1.bf16.msra.mxu1 %v2740_v12  ;;  %v2774_v33 = vld [vmem:[%s4199_s1 + $0x1f4] ss:$8 sps:$4 sm:$0xff]   ;;  %v2773_v34 = vld [vmem:[%s4199_s1 + $0xf0] ss:$8 sps:$4 sm:$0xff]   ;;  %v2777_v35 = vld [vmem:[%s4199_s1 + $0xe4] ss:$8 sps:$4 sm:$0xff]  }
   0xd   :  { %744 = vmatprep.subr.bf16.mxu1 %v2744_v13  ;;  %v2776_v36 = vld [vmem:[%s4199_s1 + $0x1f0] ss:$8 sps:$4 sm:$0xff]   ;;  %v2780_v37 = vld [vmem:[%s4199_s1 + $0x1e4] ss:$8 sps:$4 sm:$0xff]   ;;  %v2779_v38 = vld [vmem:[%s4199_s1 + $0xe0] ss:$8 sps:$4 sm:$0xff]  }
   0xe   :  { %v2783_v39 = vld [vmem:[%s4199_s1 + $0xd4] ss:$8 sps:$4 sm:$0xff]   ;;  %v2782_v40 = vld [vmem:[%s4199_s1 + $0x1e0] ss:$8 sps:$4 sm:$0xff]   ;;  %v2785_v42 = vld [vmem:[%s4199_s1 + $0xd0] ss:$8 sps:$4 sm:$0xff]  }
   0xf   :  { %692 = vmatpush1.bf16.msra.mxu0 %v2743_v14  ;;  %v2786_v41 = vld [vmem:[%s4199_s1 + $0x1d4] ss:$8 sps:$4 sm:$0xff]   ;;  %v2789_v43 = vld [vmem:[%s4199_s1 + $0xc4] ss:$8 sps:$4 sm:$0xff]   ;;  %v2788_v44 = vld [vmem:[%s4199_s1 + $0x1d0] ss:$8 sps:$4 sm:$0xff]  }
  0x10   :  { %693 = vmatprep.subr.bf16.mxu0 %v2747_v15  ;;  %745 = vmatpush1.bf16.msra.mxu1 %v2746_v16  ;;  %v2792_v45 = vld [vmem:[%s4199_s1 + $0x1c4] ss:$8 sps:$4 sm:$0xff]   ;;  %v2791_v48 = vld [vmem:[%s4199_s1 + $0xc0] ss:$8 sps:$4 sm:$0xff]   ;;  %v2795_v50 = vld [vmem:[%s4199_s1 + $0xb4] ss:$8 sps:$4 sm:$0xff]  }
  0x11   :  { %746 = vmatprep.subr.bf16.mxu1 %v2750_v17  ;;  %v37_v46 = vld [vmem:[%s4198_s0 + $0x8] sm:$0xff]  ;;  %v44_v47 = vld [vmem:[%s4198_s0 + $0x40] sm:$0xff]  ;;  %v39_v52 = vld [vmem:[%s4198_s0 + $0x18] sm:$0xff] }
  0x12   :  { %v65_v49 = vpack.c.bf16 %v44_v47, %v37_v46  ;;  %v2794_v51 = vld [vmem:[%s4199_s1 + $0x1c0] ss:$8 sps:$4 sm:$0xff]   ;;  %v46_v53 = vld [vmem:[%s4198_s0 + $0x50] sm:$0xff]  ;;  %v2801_v57 = vld [vmem:[%s4199_s1 + $0xa4] ss:$8 sps:$4 sm:$0xff]  }
  0x13   :  { %694 = vmatpush1.bf16.msra.mxu0 %v2749_v18  ;;  %v2798_v54 = vld [vmem:[%s4199_s1 + $0x1b4] ss:$8 sps:$4 sm:$0xff]   ;;  %v67_v55 = vpack.c.bf16 %v46_v53, %v39_v52  ;;  %v2797_v56 = vld [vmem:[%s4199_s1 + $0xb0] ss:$8 sps:$4 sm:$0xff]   ;;  %v2804_v59 = vld [vmem:[%s4199_s1 + $0x1a4] ss:$8 sps:$4 sm:$0xff]  }
  0x14   :  { %695 = vmatprep.subr.bf16.mxu0 %v2753_v19  ;;  %747 = vmatpush1.bf16.msra.mxu1 %v2752_v20  ;;  %v2800_v58 = vld [vmem:[%s4199_s1 + $0x1b0] ss:$8 sps:$4 sm:$0xff]   ;;  %v2803_v60 = vld [vmem:[%s4199_s1 + $0xa0] ss:$8 sps:$4 sm:$0xff]   ;;  %v2807_v61 = vld [vmem:[%s4199_s1 + $0x94] ss:$8 sps:$4 sm:$0xff]  }
  0x15   :  { %748 = vmatprep.subr.bf16.mxu1 %v2756_v21  ;;  %717 = vmatprep.mubr.bf16.mxu0 %v65_v49  ;;  %v2806_v62 = vld [vmem:[%s4199_s1 + $0x1a0] ss:$8 sps:$4 sm:$0xff]   ;;  %v2810_v63 = vld [vmem:[%s4199_s1 + $0x194] ss:$8 sps:$4 sm:$0xff]   ;;  %v2809_v0 = vld [vmem:[%s4199_s1 + $0x90] ss:$8 sps:$4 sm:$0xff]  }
  0x16   :  { %770 = vmatprep.mubr.bf16.mxu1 %v67_v55  ;;  %v2812_v1 = vld [vmem:[%s4199_s1 + $0x190] ss:$8 sps:$4 sm:$0xff]   ;;  %v2813_v2 = vld [vmem:[%s4199_s1 + $0x84] ss:$8 sps:$4 sm:$0xff]   ;;  %v2815_v3 = vld [vmem:[%s4199_s1 + $0x80] ss:$8 sps:$4 sm:$0xff]  }
  0x17   :  { %696 = vmatpush1.bf16.msra.mxu0 %v2755_v22  ;;  %v2816_v4 = vld [vmem:[%s4199_s1 + $0x184] ss:$8 sps:$4 sm:$0xff]   ;;  %v2818_v6 = vld [vmem:[%s4199_s1 + $0x180] ss:$8 sps:$4 sm:$0xff]   ;;  %v43_v7 = vld [vmem:[%s4198_s0 + $0x38] sm:$0xff] }
  0x18   :  { %697 = vmatprep.subr.bf16.mxu0 %v2759_v23  ;;  %749 = vmatpush1.bf16.msra.mxu1 %v2758_v24  ;;  %v36_v5 = vld [vmem:[%s4198_s0] sm:$0xff]  ;;  %v2821_v8 = vld [vmem:[%s4199_s1 + $0x274] ss:$8 sps:$4 sm:$0xff]   ;;  %v45_v10 = vld [vmem:[%s4198_s0 + $0x48] sm:$0xff] }
  0x19   :  { %750 = vmatprep.subr.bf16.mxu1 %v2762_v25  ;;  %v38_v9 = vld [vmem:[%s4198_s0 + $0x10] sm:$0xff]  ;;  %v64_v11 = vpack.c.bf16 %v43_v7, %v36_v5  ;;  %v51_v13 = vld [vmem:[%s4198_s0 + $0x78] sm:$0xff]  ;;  %v2824_v16 = vld [vmem:[%s4199_s1 + $0x264] ss:$8 sps:$4 sm:$0xff]  }
  0x1a   :  { %v2819_v12 = vld [vmem:[%s4199_s1 + $0x270] ss:$8 sps:$4 sm:$0xff]   ;;  %v66_v15 = vpack.c.bf16 %v45_v10, %v38_v9  ;;  %v2860_v18 = vld [vmem:[%s4199_s1 + $0x304] ss:$8 sps:$4 sm:$0xff]   ;;  %v2858_v19 = vld [vmem:[%s4199_s1 + $0x300] ss:$8 sps:$4 sm:$0xff]  }
  0x1b   :  { %698 = vmatpush1.bf16.msra.mxu0 %v2761_v26  ;;  %v58_v14 = vld [vmem:[%s4198_s0 + $0xb0] sm:$0xff]  ;;  %v53_v20 = vld [vmem:[%s4198_s0 + $0x88] sm:$0xff]  ;;  %v60_v21 = vld [vmem:[%s4198_s0 + $0xc0] sm:$0xff] }
  0x1c   :  { %699 = vmatprep.subr.bf16.mxu0 %v2765_v27  ;;  %751 = vmatpush1.bf16.msra.mxu1 %v2764_v28  ;;  %v72_v17 = vpack.c.bf16 %v58_v14, %v51_v13  ;;  %v2822_v22 = vld [vmem:[%s4199_s1 + $0x260] ss:$8 sps:$4 sm:$0xff]   ;;  %v2827_v23 = vld [vmem:[%s4199_s1 + $0x254] ss:$8 sps:$4 sm:$0xff]   ;;  %v74_v24 = vpack.c.bf16 %v60_v21, %v53_v20  ;;  %v2842_v49 = vld [vmem:[%s4199_s1 + $0x204] ss:$8 sps:$4 sm:$0xff]  }
  0x1d   :  { %752 = vmatprep.subr.bf16.mxu1 %v2768_v29  ;;  %v50_v25 = vld [vmem:[%s4198_s0 + $0x70] sm:$0xff]  ;;  %v57_v26 = vld [vmem:[%s4198_s0 + $0xa8] sm:$0xff]  ;;  %v52_v27 = vld [vmem:[%s4198_s0 + $0x80] sm:$0xff] }
  0x1e   :  { %v59_v28 = vld [vmem:[%s4198_s0 + $0xb8] sm:$0xff]  ;;  %v71_v29 = vpack.c.bf16 %v57_v26, %v50_v25  ;;  %v56_v46 = vld [vmem:[%s4198_s0 + $0xa0] sm:$0xff]  ;;  %v62_v7 = vld [vmem:[%s4198_s0 + $0xd0] sm:$0xff] }
  0x1f   :  { %700 = vmatpush1.bf16.msra.mxu0 %v2767_v30  ;;  %v2825_v30 = vld [vmem:[%s4199_s1 + $0x250] ss:$8 sps:$4 sm:$0xff]   ;;  %v2845_v52 = vld [vmem:[%s4199_s1 + $0x2f4] ss:$8 sps:$4 sm:$0xff]   ;;  %v2846_v55 = vld [vmem:[%s4199_s1 + $0x2e0] ss:$8 sps:$4 sm:$0xff]  }
  0x20   :  { %701 = vmatprep.subr.bf16.mxu0 %v2771_v31  ;;  %753 = vmatpush1.bf16.msra.mxu1 %v2770_v32  ;;  %v41_v31 = vld [vmem:[%s4198_s0 + $0x28] sm:$0xff]  ;;  %v48_v32 = vld [vmem:[%s4198_s0 + $0x60] sm:$0xff]  ;;  %v63_v47 = vld [vmem:[%s4198_s0 + $0xd8] sm:$0xff] }
  0x21   :  { %754 = vmatprep.subr.bf16.mxu1 %v2774_v33  ;;  %v2830_v33 = vld [vmem:[%s4199_s1 + $0x244] ss:$8 sps:$4 sm:$0xff]   ;;  %v2843_v53 = vld [vmem:[%s4199_s1 + $0x2f0] ss:$8 sps:$4 sm:$0xff]  }
  0x22   :  { %v47_v5 = vld [vmem:[%s4198_s0 + $0x58] sm:$0xff]  ;;  %v54_v10 = vld [vmem:[%s4198_s0 + $0x90] sm:$0xff] }
  0x23   :  { %702 = vmatpush2.bf16.msra.mxu0 %v2773_v34  ;;  %v73_v34 = vpack.c.bf16 %v59_v28, %v52_v27 }
  0x24   :  { %703 = vmatprep.subr.bf16.mxu0 %v2777_v35  ;;  %755 = vmatpush2.bf16.msra.mxu1 %v2776_v36  ;;  %v69_v35 = vpack.c.bf16 %v48_v32, %v41_v31  ;;  %v2828_v36 = vld [vmem:[%s4199_s1 + $0x240] ss:$8 sps:$4 sm:$0xff]  }
  0x25   :  { %756 = vmatprep.subr.bf16.mxu1 %v2780_v37  ;;  %v2833_v37 = vld [vmem:[%s4199_s1 + $0x234] ss:$8 sps:$4 sm:$0xff]  }
  0x27   :  { %704 = vmatpush2.bf16.msra.mxu0 %v2779_v38  ;;  %v42_v38 = vld [vmem:[%s4198_s0 + $0x30] sm:$0xff] }
  0x28   :  { %705 = vmatprep.subr.bf16.mxu0 %v2783_v39  ;;  %757 = vmatpush2.bf16.msra.mxu1 %v2782_v40  ;;  %v49_v39 = vld [vmem:[%s4198_s0 + $0x68] sm:$0xff]  ;;  %v2831_v40 = vld [vmem:[%s4199_s1 + $0x230] ss:$8 sps:$4 sm:$0xff]  }
  0x29   :  { %758 = vmatprep.subr.bf16.mxu1 %v2786_v41  ;;  %v3192_v41 = vmov 0  }
  0x2b   :  { %706 = vmatpush2.bf16.msra.mxu0 %v2785_v42  ;;  %v2836_v42 = vld [vmem:[%s4199_s1 + $0x224] ss:$8 sps:$4 sm:$0xff]  }
  0x2c   :  { %707 = vmatprep.subr.bf16.mxu0 %v2789_v43  ;;  %759 = vmatpush2.bf16.msra.mxu1 %v2788_v44  ;;  %v70_v43 = vpack.c.bf16 %v49_v39, %v42_v38  ;;  %v2834_v44 = vld [vmem:[%s4199_s1 + $0x220] ss:$8 sps:$4 sm:$0xff]  }
  0x2d   :  { %760 = vmatprep.subr.bf16.mxu1 %v2792_v45  ;;  %v2839_v45 = vld [vmem:[%s4199_s1 + $0x214] ss:$8 sps:$4 sm:$0xff]  }
  0x2f   :  { %708 = vmatpush2.bf16.msra.mxu0 %v2791_v48  ;;  %v2837_v48 = vld [vmem:[%s4199_s1 + $0x210] ss:$8 sps:$4 sm:$0xff]  }
  0x30   :  { %709 = vmatprep.subr.bf16.mxu0 %v2795_v50  ;;  %761 = vmatpush2.bf16.msra.mxu1 %v2794_v51  ;;  %v77_v50 = vpack.c.bf16 %v63_v47, %v56_v46  ;;  %v2840_v51 = vld [vmem:[%s4199_s1 + $0x200] ss:$8 sps:$4 sm:$0xff]  }
  0x31   :  { %762 = vmatprep.subr.bf16.mxu1 %v2798_v54  ;;  %v2848_v54 = vld [vmem:[%s4199_s1 + $0x2e4] ss:$8 sps:$4 sm:$0xff]  }
  0x33   :  { %710 = vmatpush2.bf16.msra.mxu0 %v2797_v56  ;;  %v2851_v56 = vld [vmem:[%s4199_s1 + $0x2d4] ss:$8 sps:$4 sm:$0xff]  }
  0x34   :  { %711 = vmatprep.subr.bf16.mxu0 %v2801_v57  ;;  %763 = vmatpush2.bf16.msra.mxu1 %v2800_v58  ;;  %v2849_v57 = vld [vmem:[%s4199_s1 + $0x2d0] ss:$8 sps:$4 sm:$0xff]   ;;  %v2854_v58 = vld [vmem:[%s4199_s1 + $0x2c4] ss:$8 sps:$4 sm:$0xff]  }
  0x35   :  { %764 = vmatprep.subr.bf16.mxu1 %v2804_v59  ;;  %v2852_v59 = vld [vmem:[%s4199_s1 + $0x2c0] ss:$8 sps:$4 sm:$0xff]  }
  0x37   :  { %712 = vmatpush2.bf16.msra.mxu0 %v2803_v60  ;;  %v2857_v60 = vld [vmem:[%s4199_s1 + $0x2b4] ss:$8 sps:$4 sm:$0xff]  }
  0x38   :  { %713 = vmatprep.subr.bf16.mxu0 %v2807_v61  ;;  %765 = vmatpush2.bf16.msra.mxu1 %v2806_v62  ;;  %v2855_v61 = vld [vmem:[%s4199_s1 + $0x2b0] ss:$8 sps:$4 sm:$0xff]   ;;  %v2863_v62 = vld [vmem:[%s4199_s1 + $0x2a4] ss:$8 sps:$4 sm:$0xff]  }
  0x39   :  { %766 = vmatprep.subr.bf16.mxu1 %v2810_v63  ;;  %v2861_v63 = vld [vmem:[%s4199_s1 + $0x2a0] ss:$8 sps:$4 sm:$0xff]  }
  0x3b   :  { %714 = vmatpush2.bf16.msra.mxu0 %v2809_v0  ;;  %v2866_v0 = vld [vmem:[%s4199_s1 + $0x294] ss:$8 sps:$4 sm:$0xff]  }
  0x3c   :  { %715 = vmatprep.subr.bf16.mxu0 %v2813_v2  ;;  %767 = vmatpush2.bf16.msra.mxu1 %v2812_v1  ;;  %v2864_v1 = vld [vmem:[%s4199_s1 + $0x290] ss:$8 sps:$4 sm:$0xff]   ;;  %v2869_v2 = vld [vmem:[%s4199_s1 + $0x284] ss:$8 sps:$4 sm:$0xff]  }
  0x3d   :  { %768 = vmatprep.subr.bf16.mxu1 %v2816_v4  ;;  %v40_v4 = vld [vmem:[%s4198_s0 + $0x20] sm:$0xff] }
  0x3f   :  { %716 = vmatpush2.bf16.msra.mxu0 %v2815_v3  ;;  %v2867_v3 = vld [vmem:[%s4199_s1 + $0x280] ss:$8 sps:$4 sm:$0xff]  }
  0x40   :  { %791 = vmatprep.subr.bf16.mxu0 %v2821_v8  ;;  %769 = vmatpush2.bf16.msra.mxu1 %v2818_v6  ;;  %v55_v6 = vld [vmem:[%s4198_s0 + $0x98] sm:$0xff]  ;;  %v68_v8 = vpack.c.bf16 %v47_v5, %v40_v4 }
  0x41   :  { %858 = vmatprep.subr.bf16.mxu1 %v2860_v18  ;;  %v76_v9 = vpack.c.bf16 %v62_v7, %v55_v6 }
  0x42   :  { %718 = vmatmul.mubr.bf16.vlgmr.msra.gmra.mxu0 %v64_v11  ;;  %v61_v11 = vld [vmem:[%s4198_s0 + $0xc8] sm:$0xff] }
  0x43   :  { %792 = vmatpush1.bf16.msra.mxu0 %v2819_v12  ;;  %727 = vmatprep.mubr.bf16.mxu0 %v72_v17 }
  0x44   :  { %771 = vmatmul.mubr.bf16.vlgmr.msra.gmra.mxu1 %v66_v15  ;;  %793 = vmatprep.subr.bf16.mxu0 %v2824_v16 }
  0x45   :  { %859 = vmatpush1.bf16.msra.mxu1 %v2858_v19  ;;  %780 = vmatprep.mubr.bf16.mxu1 %v74_v24 }
  0x47   :  { %794 = vmatpush1.bf16.msra.mxu0 %v2822_v22 }
  0x48   :  { %795 = vmatprep.subr.bf16.mxu0 %v2827_v23 }
  0x4a   :  { %728 = vmatmul.mubr.bf16.gmra.mxu0 %v71_v29 }
  0x4b   :  { %796 = vmatpush1.bf16.msra.mxu0 %v2825_v30  ;;  %823 = vmatprep.mubr.bf16.mxu0 %v69_v35 }
  0x4c   :  { %797 = vmatprep.subr.bf16.mxu0 %v2830_v33  ;;  %781 = vmatmul.mubr.bf16.gmra.mxu1 %v73_v34 }
  0x4d   :  { %876 = vmatprep.mubr.bf16.mxu1 %v3192_v41 }
  0x4f   :  { %798 = vmatpush1.bf16.msra.mxu0 %v2828_v36 }
  0x50   :  { %799 = vmatprep.subr.bf16.mxu0 %v2833_v37 }
  0x53   :  { %800 = vmatpush1.bf16.msra.mxu0 %v2831_v40 }
  0x54   :  { %801 = vmatprep.subr.bf16.mxu0 %v2836_v42  ;;  %2494 = vmatmul.mubr.msk.bf16.vlgmr.msra.gmra.mxu1 %vm678_vm0, %v70_v43 }
  0x55   :  { %886 = vmatprep.mubr.bf16.mxu1 %v3192_v41 }
  0x57   :  { %802 = vmatpush1.bf16.msra.mxu0 %v2834_v44 }
  0x58   :  { %803 = vmatprep.subr.bf16.mxu0 %v2839_v45 }
  0x5b   :  { %804 = vmatpush1.bf16.msra.mxu0 %v2837_v48 }
  0x5c   :  { %805 = vmatprep.subr.bf16.mxu0 %v2842_v49  ;;  %2495 = vmatmul.mubr.msk.bf16.gmra.mxu1 %vm678_vm0, %v77_v50 }
  0x5f   :  { %806 = vmatpush1.bf16.msra.mxu0 %v2840_v51 }
  0x60   :  { %807 = vmatprep.subr.bf16.mxu0 %v2845_v52 }
  0x63   :  { %808 = vmatpush2.bf16.msra.mxu0 %v2843_v53 }
  0x64   :  { %809 = vmatprep.subr.bf16.mxu0 %v2848_v54 }
  0x67   :  { %810 = vmatpush2.bf16.msra.mxu0 %v2846_v55 }
  0x68   :  { %811 = vmatprep.subr.bf16.mxu0 %v2851_v56 }
  0x6b   :  { %812 = vmatpush2.bf16.msra.mxu0 %v2849_v57 }
  0x6c   :  { %813 = vmatprep.subr.bf16.mxu0 %v2854_v58 }
  0x6f   :  { %814 = vmatpush2.bf16.msra.mxu0 %v2852_v59 }
  0x70   :  { %815 = vmatprep.subr.bf16.mxu0 %v2857_v60 }
  0x73   :  { %816 = vmatpush2.bf16.msra.mxu0 %v2855_v61 }
  0x74   :  { %817 = vmatprep.subr.bf16.mxu0 %v2863_v62 }
  0x77   :  { %818 = vmatpush2.bf16.msra.mxu0 %v2861_v63 }
  0x78   :  { %819 = vmatprep.subr.bf16.mxu0 %v2866_v0 }
  0x7b   :  { %820 = vmatpush2.bf16.msra.mxu0 %v2864_v1 }
  0x7c   :  { %821 = vmatprep.subr.bf16.mxu0 %v2869_v2 }
  0x7f   :  { %822 = vmatpush2.bf16.msra.mxu0 %v2867_v3 }
  0x82   :  { %824 = vmatmul.mubr.bf16.vlgmr.msra.gmra.mxu0 %v68_v8 }
  0x83   :  { %833 = vmatprep.mubr.bf16.mxu0 %v76_v9 }
  0x84   :  { %16 = vsyncpa [#allocation3], 0  ;;  %v75_v12 = vpack.c.bf16 %v61_v11, %v54_v10  ;;  %v2870_v13 = vld [vmem:[%s4201_s3 + $0x78] sm:$0xff]   ;;  %v2872_v15 = vld [vmem:[%s4201_s3 + $0x70] sm:$0xff]   ;;  %v178_v40 = vlaneseq  ;;  %vm1155_vm1 = vcmask 523264   ;;  %s3193_s1 = smov [#allocation2]  }
  0x85   :  { %v2871_v14 = vld [vmem:[%s4201_s3 + $0x38] sm:$0xff]   ;;  %2663 = vmatprep.subr.bf16.mxu1 %v2870_v13  ;;  %v2873_v16 = vld [vmem:[%s4201_s3 + $0x30] sm:$0xff]   ;;  %v2874_v17 = vld [vmem:[%s4201_s3 + $0x68] sm:$0xff]   ;;  %s2383_s21 = sshll.u32 %s3193_s1, 4  ;;  %s2384_s21 = int_to_ptr.vmem [resolvable:$true] %s2383_s21 }
  0x86   :  { %2664 = vmatpush3.bf16.msra.mxu1 %v2871_v14  ;;  %v2875_v18 = vld [vmem:[%s4201_s3 + $0x28] sm:$0xff]   ;;  %v2876_v19 = vld [vmem:[%s4201_s3 + $0x60] sm:$0xff]   ;;  %v2878_v21 = vld [vmem:[%s4201_s3 + $0x58] sm:$0xff]   ;;  %v3684_v44 = vshrl.u32 %v178_v40, 7  ;;  %s3170_s22 = scalar_lea.vmem %s2384_s21, 512  ;;  %p3175_p1 = scmp.lt.s32.totalorder %s2384_s21, %s2384_s21 }
  0x87   :  { %2665 = vmatprep.subr.bf16.mxu1 %v2872_v15  ;;  %v2877_v20 = vld [vmem:[%s4201_s3 + $0x20] sm:$0xff]   ;;  %v2879_v22 = vld [vmem:[%s4201_s3 + $0x18] sm:$0xff]   ;;  %v2880_v23 = vld [vmem:[%s4201_s3 + $0x50] sm:$0xff]   ;;  %p3171_p0 = scmp.ne.s32.totalorder %s2384_s21, %s3170_s22  ;;  %p3176_p2 = scmp.lt.s32.totalorder %s3170_s22, %s3170_s22 }
  0x88   :  { %v2881_v24 = vld [vmem:[%s4201_s3 + $0x10] sm:$0xff]   ;;  %v2882_v25 = vld [vmem:[%s4201_s3 + $0x48] sm:$0xff]   ;;  %v2884_v27 = vld [vmem:[%s4201_s3 + $0x40] sm:$0xff]   ;;  %v3687_v47 = vsub.s32 1, %v3684_v44  ;;  %v3693_v49 = vsub.s32 0, %v3684_v44 }
  0x89   :  { %v2883_v26 = vld [vmem:[%s4201_s3 + $0x8] sm:$0xff]   ;;  %v2885_v28 = vld [vmem:[%s4201_s3] sm:$0xff]   ;;  %v2888_v29 = vld [vmem:[%s4203_s5 + $0x34] ss:$8 sps:$4 sm:$0xff]   ;;  %p3177_p3 = por %p3176_p2, %p3175_p1 }
  0x8a   :  { %834 = vmatmul.mubr.bf16.gmra.mxu0 %v75_v12  ;;  %2666 = vmatpush3.bf16.msra.mxu1 %v2873_v16  ;;  %v176_v48 = vld [vmem:[%s4200_s2] sm:$0x3] }
  0x8b   :  { %2667 = vmatprep.subr.bf16.mxu1 %v2874_v17  ;;  %v185_v52 = vrot.slane %v176_v48, %v3687_v47  ;;  %v181_v53 = vrot.slane %v176_v48, %v3693_v49  ;;  %p3178_p4 = pnand %p3177_p3, %p3171_p0 }
  0x8e   :  { %2668 = vmatpush3.bf16.msra.mxu1 %v2875_v18 }
  0x8f   :  { %2669 = vmatprep.subr.bf16.mxu1 %v2876_v19 }
  0x92   :  { %2670 = vmatpush3.bf16.msra.mxu1 %v2877_v20 }
  0x93   :  { %2671 = vmatprep.subr.bf16.mxu1 %v2878_v21 }
  0x96   :  { %2672 = vmatpush3.bf16.msra.mxu1 %v2879_v22 }
  0x97   :  { %2673 = vmatprep.subr.bf16.mxu1 %v2880_v23 }
  0x9a   :  { %2674 = vmatpush3.bf16.msra.mxu1 %v2881_v24 }
  0x9b   :  { %2675 = vmatprep.subr.bf16.mxu1 %v2882_v25 }
  0x9e   :  { %2676 = vmatpush3.bf16.msra.mxu1 %v2883_v26 }
  0x9f   :  { %2677 = vmatprep.subr.bf16.mxu1 %v2884_v27 }
  0xa2   :  { %2678 = vmatpush3.bf16.msra.mxu1 %v2885_v28 }
  0xa3   :  { %1170 = vmatprep.subr.bf16.mxu1 %v2888_v29 }
 0x102   :  { %v719_v34 = vpop.f32.mrf.mxu0 }
 0x103   :  { %v720_v57 = vadd.f32 %v719_v34, %v181_v53 }
 0x104   :  { %v772_v30 = vpop.f32.mrf.mxu1  ;;  %v721_v36 = vpop.f32.mrf.mxu0 }
 0x105   :  { %v722_v56 = vadd.f32 %v721_v36, %v185_v52  ;;  %v773_v0 = vadd.f32 %v772_v30, %v720_v57  ;;  %v2894_v57 = vld [vmem:[%s4203_s5 + $0x14] ss:$8 sps:$4 sm:$0xff]  }
 0x106   :  { %v774_v31 = vpop.f32.mrf.mxu1  ;;  %v723_v38 = vpop.f32.mrf.mxu0 }
 0x107   :  { %v724_v59 = vadd.f32 %v723_v38, %v181_v53  ;;  %v775_v62 = vadd.f32 %v774_v31, %v722_v56  ;;  %v2889_v56 = vld [vmem:[%s4203_s5 + $0x20] ss:$8 sps:$4 sm:$0xff]  }
 0x108   :  { %v776_v32 = vpop.f32.mrf.mxu1  ;;  %v725_v42 = vpop.f32.mrf.mxu0 }
 0x109   :  { %v726_v63 = vadd.f32 %v725_v42, %v185_v52  ;;  %v777_v3 = vadd.f32 %v776_v32, %v724_v59  ;;  %v2897_v59 = vld [vmem:[%s4203_s5 + $0x4] ss:$8 sps:$4 sm:$0xff]  }
 0x10a   :  { %v778_v33 = vpop.f32.mrf.mxu1  ;;  %v729_v45 = vpop.f32.mrf.mxu0 }
 0x10b   :  { %v779_v7 = vadd.f32 %v778_v33, %v726_v63  ;;  %v730_v10 = vadd.f32 %v729_v45, %v181_v53  ;;  %v2903_v63 = vld [vmem:[%s4205_s7 + $0x194] ss:$28 sps:$4 sm:$0xff]  }
 0x10c   :  { %v782_v35 = vpop.f32.mrf.mxu1  ;;  %v731_v50 = vpop.f32.mrf.mxu0 }
 0x10d   :  { %v732_v8 = vadd.f32 %v731_v50, %v185_v52  ;;  %v783_v22 = vadd.f32 %v782_v35, %v730_v10  ;;  %v2936_v10 = vld [vmem:[%s4205_s7 + $0x3c] ss:$28 sps:$4 sm:$0xff]  }
 0x10e   :  { %v784_v37 = vpop.f32.mrf.mxu1  ;;  %v733_v54 = vpop.f32.mrf.mxu0 }
 0x10f   :  { %v734_v13 = vadd.f32 %v733_v54, %v181_v53  ;;  %v785_v19 = vadd.f32 %v784_v37, %v732_v8  ;;  %v2886_v37 = vld [vmem:[%s4203_s5 + $0x30] ss:$8 sps:$4 sm:$0xff]  }
 0x110   :  { %v786_v39 = vpop.f32.mrf.mxu1  ;;  %v735_v58 = vpop.f32.mrf.mxu0  ;;  %v2930_v8 = vld [vmem:[%s4205_s7 + $0x74] ss:$28 sps:$4 sm:$0xff]  }
 0x111   :  { %v736_v20 = vadd.f32 %v735_v58, %v185_v52  ;;  %v787_v26 = vadd.f32 %v786_v39, %v734_v13  ;;  %v2892_v58 = vld [vmem:[%s4203_s5 + $0x10] ss:$8 sps:$4 sm:$0xff]   ;;  %v2940_v13 = vld [vmem:[%s4205_s7] ss:$28 sps:$4 sm:$0xff]  }
 0x112   :  { %v788_v43 = vpop.f32.mrf.mxu1 }
 0x113   :  { %v789_v33 = vadd.f32 %v788_v43, %v736_v20  ;;  %v2966_v20 = vld [vmem:[%s4205_s7 + $0x2a4] ss:$28 sps:$4 sm:$0xff]  }
 0x114   :  { %v878_v46 = vpop.f32.mrf.mxu1 }
 0x116   :  { %v880_v51 = vpop.f32.mrf.mxu1 }
 0x118   :  { %v882_v55 = vpop.f32.mrf.mxu1 }
 0x11a   :  { %v884_v61 = vpop.f32.mrf.mxu1 }
 0x11c   :  { %v888_v2 = vpop.f32.mrf.mxu1 }
 0x11e   :  { %v890_v12 = vpop.f32.mrf.mxu1 }
 0x120   :  { %v892_v25 = vpop.f32.mrf.mxu1 }
 0x122   :  { %v894_v35 = vpop.f32.mrf.mxu1 }
 0x142   :  { %v825_v60 = vpop.f32.mrf.mxu0 }
 0x143   :  { %v826_v5 = vadd.f32 %v825_v60, %v773_v0  ;;  %v2895_v60 = vld [vmem:[%s4203_s5] ss:$8 sps:$4 sm:$0xff]   ;;  %v2906_v0 = vld [vmem:[%s4205_s7 + $0x154] ss:$28 sps:$4 sm:$0xff]  }
 0x144   :  { %v827_v1 = vpop.f32.mrf.mxu0 }
 0x145   :  { %v828_v4 = vadd.f32 %v827_v1, %v775_v62  ;;  %v879_v17 = vadd.f32 %v878_v46, %v826_v5  ;;  %v2900_v62 = vld [vmem:[%s4205_s7 + $0x18c] ss:$28 sps:$4 sm:$0xff]   ;;  %v2916_v5 = vld [vmem:[%s4205_s7 + $0xe0] ss:$28 sps:$4 sm:$0xff]  }
 0x146   :  { %v829_v6 = vpop.f32.mrf.mxu0  ;;  %1968 = vmatprep.subr.bf16.mxu0 %v2900_v62  ;;  %v2904_v1 = vld [vmem:[%s4205_s7 + $0x150] ss:$28 sps:$4 sm:$0xff]  }
 0x147   :  { %v830_v9 = vadd.f32 %v829_v6, %v777_v3  ;;  %v881_v14 = vadd.f32 %v880_v51, %v828_v4  ;;  %v897_v30 = vmax.f32 %v879_v17, 0.0  ;;  %v2910_v3 = vld [vmem:[%s4205_s7 + $0x118] ss:$28 sps:$4 sm:$0xff]   ;;  %v2918_v4 = vld [vmem:[%s4205_s7 + $0xe4] ss:$28 sps:$4 sm:$0xff]  }
 0x148   :  { %v831_v11 = vpop.f32.mrf.mxu0  ;;  %v2924_v6 = vld [vmem:[%s4205_s7 + $0xac] ss:$28 sps:$4 sm:$0xff]  }
 0x149   :  { %v883_v15 = vadd.f32 %v882_v55, %v830_v9  ;;  %v832_v16 = vadd.f32 %v831_v11, %v779_v7  ;;  %v898_v27 = vmax.f32 %v881_v14, 0.0  ;;  %v2891_v55 = vld [vmem:[%s4203_s5 + $0x24] ss:$8 sps:$4 sm:$0xff]   ;;  %v2934_v11 = vld [vmem:[%s4205_s7 + $0x38] ss:$28 sps:$4 sm:$0xff]  }
 0x14a   :  { %v835_v18 = vpop.f32.mrf.mxu0  ;;  %v2922_v7 = vld [vmem:[%s4205_s7 + $0xa8] ss:$28 sps:$4 sm:$0xff]   ;;  %v2928_v9 = vld [vmem:[%s4205_s7 + $0x70] ss:$28 sps:$4 sm:$0xff]  }
 0x14b   :  { %v885_v21 = vadd.f32 %v884_v61, %v832_v16  ;;  %v899_v23 = vmax.f32 %v883_v15, 0.0  ;;  %v836_v31 = vadd.f32 %v835_v18, %v783_v22  ;;  %v2898_v61 = vld [vmem:[%s4205_s7 + $0x188] ss:$28 sps:$4 sm:$0xff]   ;;  %v2954_v16 = vld [vmem:[%s4205_s7 + $0x314] ss:$28 sps:$4 sm:$0xff]  }
 0x14c   :  { %v837_v24 = vpop.f32.mrf.mxu0  ;;  %1969 = vmatpush1.bf16.msra.mxu0 %v2898_v61  ;;  %v2948_v14 = vld [vmem:[%s4205_s7 + $0x34c] ss:$28 sps:$4 sm:$0xff]   ;;  %v2960_v18 = vld [vmem:[%s4205_s7 + $0x2dc] ss:$28 sps:$4 sm:$0xff]   ;;  %v2951_v61 = vld [vmem:[%s4205_s7 + $0x354] ss:$28 sps:$4 sm:$0xff]  }
 0x14d   :  { %v900_v28 = vmax.f32 %v885_v21, 0.0  ;;  %v838_v29 = vadd.f32 %v837_v24, %v785_v19  ;;  %v905_v38 = vpack.c.bf16 %v899_v23, %v897_v30  ;;  %v889_v39 = vadd.f32 %v888_v2, %v836_v31  ;;  %1970 = vmatprep.subr.bf16.mxu0 %v2906_v0  ;;  %v2912_v2 = vld [vmem:[%s4205_s7 + $0x11c] ss:$28 sps:$4 sm:$0xff]   ;;  %v2946_v15 = vld [vmem:[%s4205_s7 + $0x348] ss:$28 sps:$4 sm:$0xff]  }
 0x14e   :  { %v839_v32 = vpop.f32.mrf.mxu0  ;;  %v2952_v17 = vld [vmem:[%s4205_s7 + $0x310] ss:$28 sps:$4 sm:$0xff]   ;;  %v2958_v19 = vld [vmem:[%s4205_s7 + $0x2d8] ss:$28 sps:$4 sm:$0xff]   ;;  %v2964_v21 = vld [vmem:[%s4205_s7 + $0x2a0] ss:$28 sps:$4 sm:$0xff]  }
 0x14f   :  { %v840_v34 = vadd.f32 %v839_v32, %v787_v26  ;;  %v906_v36 = vpack.c.bf16 %v900_v28, %v898_v27  ;;  %v891_v42 = vadd.f32 %v890_v12, %v838_v29  ;;  %v901_v52 = vmax.f32 %v889_v39, 0.0  ;;  %v2942_v12 = vld [vmem:[%s4205_s7 + $0x4] ss:$28 sps:$4 sm:$0xff]   ;;  %v2972_v22 = vld [vmem:[%s4205_s7 + $0x26c] ss:$28 sps:$4 sm:$0xff]  }
 0x150   :  { %v841_v40 = vpop.f32.mrf.mxu0  ;;  %1971 = vmatpush1.bf16.msra.mxu0 %v2904_v1  ;;  %v2970_v23 = vld [vmem:[%s4205_s7 + $0x268] ss:$28 sps:$4 sm:$0xff]   ;;  %v2949_v62 = vld [vmem:[%s4205_s7 + $0x350] ss:$28 sps:$4 sm:$0xff]   ;;  %v2955_v0 = vld [vmem:[%s4205_s7 + $0x318] ss:$28 sps:$4 sm:$0xff]  }
 0x151   :  { %v842_v45 = vadd.f32 %v841_v40, %v789_v33  ;;  %v893_v46 = vadd.f32 %v892_v25, %v840_v34  ;;  %1076 = vmatprep.mubr.bf16.mxu1 %v906_v36  ;;  %v902_v51 = vmax.f32 %v891_v42, 0.0  ;;  %1972 = vmatprep.subr.bf16.mxu0 %v2912_v2  ;;  %v2496_v25 = vld [vmem:[%s4202_s4] ss:$0 sm:$0xff]  ;;  %v2901_v36 = vld [vmem:[%s4205_s7 + $0x190] ss:$28 sps:$4 sm:$0xff]  }
 0x152   :  { %1077 = vmatmul.mubr.bf16.vlgmr.msra.gmra.mxu1 %v905_v38  ;;  %v2909_v40 = vld [vmem:[%s4205_s7 + $0x15c] ss:$28 sps:$4 sm:$0xff]   ;;  %v2963_v1 = vld [vmem:[%s4205_s7 + $0x2e4] ss:$28 sps:$4 sm:$0xff]  }
 0x153   :  { %v895_v48 = vadd.f32 %v894_v35, %v842_v45  ;;  %1171 = vmatpush1.bf16.msra.mxu1 %v2886_v37  ;;  %v903_v50 = vmax.f32 %v893_v46, 0.0  ;;  %v2907_v46 = vld [vmem:[%s4205_s7 + $0x158] ss:$28 sps:$4 sm:$0xff]   ;;  %v2961_v2 = vld [vmem:[%s4205_s7 + $0x2e0] ss:$28 sps:$4 sm:$0xff]  }
 0x154   :  { %1172 = vmatprep.subr.bf16.mxu1 %v2891_v55  ;;  %1973 = vmatpush1.bf16.msra.mxu0 %v2910_v3  ;;  %v2933_v55 = vld [vmem:[%s4205_s7 + $0x7c] ss:$28 sps:$4 sm:$0xff]   ;;  %v2969_v3 = vld [vmem:[%s4205_s7 + $0x2ac] ss:$28 sps:$4 sm:$0xff]  }
 0x155   :  { %v904_v43 = vmax.f32 %v895_v48, 0.0  ;;  %v907_v54 = vpack.c.bf16 %v903_v50, %v901_v52  ;;  %1974 = vmatprep.subr.bf16.mxu0 %v2918_v4  ;;  %v2915_v48 = vld [vmem:[%s4205_s7 + $0x124] ss:$28 sps:$4 sm:$0xff]  }
 0x156   :  { %v2919_v52 = vld [vmem:[%s4205_s7 + $0xe8] ss:$28 sps:$4 sm:$0xff]  }
 0x157   :  { %v908_v53 = vpack.c.bf16 %v904_v43, %v902_v51  ;;  %1173 = vmatpush1.bf16.msra.mxu1 %v2889_v56  ;;  %v2913_v51 = vld [vmem:[%s4205_s7 + $0x120] ss:$28 sps:$4 sm:$0xff]   ;;  %v2921_v43 = vld [vmem:[%s4205_s7 + $0xec] ss:$28 sps:$4 sm:$0xff]   ;;  %v2931_v56 = vld [vmem:[%s4205_s7 + $0x78] ss:$28 sps:$4 sm:$0xff]  }
 0x158   :  { %1174 = vmatprep.subr.bf16.mxu1 %v2894_v57  ;;  %1975 = vmatpush1.bf16.msra.mxu0 %v2916_v5  ;;  %v2939_v57 = vld [vmem:[%s4205_s7 + $0x44] ss:$28 sps:$4 sm:$0xff]   ;;  %v2975_v5 = vld [vmem:[%s4205_s7 + $0x274] ss:$28 sps:$4 sm:$0xff]  }
 0x159   :  { %1084 = vmatprep.mubr.bf16.mxu1 %v908_v53  ;;  %1976 = vmatprep.subr.bf16.mxu0 %v2924_v6  ;;  %v2927_v53 = vld [vmem:[%s4205_s7 + $0xb4] ss:$28 sps:$4 sm:$0xff]   ;;  %v2967_v4 = vld [vmem:[%s4205_s7 + $0x2a8] ss:$28 sps:$4 sm:$0xff]  }
 0x15a   :  { %1085 = vmatmul.mubr.bf16.gmra.mxu1 %v907_v54  ;;  %v2925_v54 = vld [vmem:[%s4205_s7 + $0xb0] ss:$28 sps:$4 sm:$0xff]  }
 0x15b   :  { %1194 = vmatprep.mubr.bf16.mxu1 %v3192_v41  ;;  %1175 = vmatpush1.bf16.msra.mxu1 %v2892_v58  ;;  %v2937_v58 = vld [vmem:[%s4205_s7 + $0x40] ss:$28 sps:$4 sm:$0xff]   ;;  %v2973_v6 = vld [vmem:[%s4205_s7 + $0x270] ss:$28 sps:$4 sm:$0xff]  }
 0x15c   :  { %1176 = vmatprep.subr.bf16.mxu1 %v2897_v59  ;;  %1977 = vmatpush1.bf16.msra.mxu0 %v2922_v7  ;;  %v2945_v59 = vld [vmem:[%s4205_s7 + $0xc] ss:$28 sps:$4 sm:$0xff]   ;;  %v2978_v7 = vld [vmem:[%s4205_s7 + $0x234] ss:$28 sps:$4 sm:$0xff]  }
 0x15d   :  { %1978 = vmatprep.subr.bf16.mxu0 %v2930_v8  ;;  %v2981_v8 = vld [vmem:[%s4205_s7 + $0x23c] ss:$28 sps:$4 sm:$0xff]  }
 0x15f   :  { %1177 = vmatpush1.bf16.msra.mxu1 %v2895_v60  ;;  %v2943_v60 = vld [vmem:[%s4205_s7 + $0x8] ss:$28 sps:$4 sm:$0xff]  }
 0x160   :  { %2021 = vmatprep.subr.bf16.mxu1 %v2903_v63  ;;  %1979 = vmatpush1.bf16.msra.mxu0 %v2928_v9  ;;  %v2957_v63 = vld [vmem:[%s4205_s7 + $0x31c] ss:$28 sps:$4 sm:$0xff]   ;;  %v2976_v9 = vld [vmem:[%s4205_s7 + $0x230] ss:$28 sps:$4 sm:$0xff]  }
 0x161   :  { %1980 = vmatprep.subr.bf16.mxu0 %v2936_v10  ;;  %v2979_v10 = vld [vmem:[%s4205_s7 + $0x238] ss:$28 sps:$4 sm:$0xff]  }
 0x164   :  { %1981 = vmatpush1.bf16.msra.mxu0 %v2934_v11  ;;  %v2984_v11 = vld [vmem:[%s4205_s7 + $0x1fc] ss:$28 sps:$4 sm:$0xff]  }
 0x165   :  { %1982 = vmatprep.subr.bf16.mxu0 %v2942_v12  ;;  %v2987_v12 = vld [vmem:[%s4205_s7 + $0x204] ss:$28 sps:$4 sm:$0xff]  }
 0x168   :  { %1983 = vmatpush1.bf16.msra.mxu0 %v2940_v13  ;;  %v2982_v13 = vld [vmem:[%s4205_s7 + $0x1f8] ss:$28 sps:$4 sm:$0xff]  }
 0x169   :  { %1984 = vmatprep.subr.bf16.mxu0 %v2948_v14  ;;  %v2985_v14 = vld [vmem:[%s4205_s7 + $0x200] ss:$28 sps:$4 sm:$0xff]  }
 0x16c   :  { %1985 = vmatpush2.bf16.msra.mxu0 %v2946_v15  ;;  %v2990_v15 = vld [vmem:[%s4205_s7 + $0x1c4] ss:$28 sps:$4 sm:$0xff]  }
 0x16d   :  { %1986 = vmatprep.subr.bf16.mxu0 %v2954_v16  ;;  %v2993_v16 = vld [vmem:[%s4205_s7 + $0x1cc] ss:$28 sps:$4 sm:$0xff]  }
 0x170   :  { %1987 = vmatpush2.bf16.msra.mxu0 %v2952_v17  ;;  %v2988_v17 = vld [vmem:[%s4205_s7 + $0x1c0] ss:$28 sps:$4 sm:$0xff]  }
 0x171   :  { %1988 = vmatprep.subr.bf16.mxu0 %v2960_v18  ;;  %v2991_v18 = vld [vmem:[%s4205_s7 + $0x1c8] ss:$28 sps:$4 sm:$0xff]  }
 0x174   :  { %1989 = vmatpush2.bf16.msra.mxu0 %v2958_v19  ;;  %v2996_v19 = vld [vmem:[%s4205_s7 + $0x19c] ss:$28 sps:$4 sm:$0xff]  }
 0x175   :  { %1990 = vmatprep.subr.bf16.mxu0 %v2966_v20  ;;  %v2997_v20 = vld [vmem:[%s4205_s7 + $0x360] ss:$28 sps:$4 sm:$0xff]  }
 0x178   :  { %1991 = vmatpush2.bf16.msra.mxu0 %v2964_v21  ;;  %v1103_v21 = vld [vmem:[%s4204_s6] sm:$0x3] }
 0x179   :  { %1992 = vmatprep.subr.bf16.mxu0 %v2972_v22 }
 0x17c   :  { %1993 = vmatpush2.bf16.msra.mxu0 %v2970_v23  ;;  %v1112_v23 = vrot.slane %v1103_v21, %v3687_v47 }
 0x17d   :  { %1994 = vmatprep.subr.bf16.mxu0 %v2978_v7  ;;  %v3014_v7 = vld [vmem:[%s4205_s7 + $0xb8] ss:$28 sps:$4 sm:$0xff]  }
 0x180   :  { %1995 = vmatpush2.bf16.msra.mxu0 %v2976_v9  ;;  %v3021_v9 = vld [vmem:[%s4205_s7 + $0x84] ss:$28 sps:$4 sm:$0xff]  }
 0x181   :  { %1996 = vmatprep.subr.bf16.mxu0 %v2984_v11  ;;  %v3019_v11 = vld [vmem:[%s4205_s7 + $0x80] ss:$28 sps:$4 sm:$0xff]  }
 0x184   :  { %1997 = vmatpush2.bf16.msra.mxu0 %v2982_v13  ;;  %v3026_v13 = vld [vmem:[%s4205_s7 + $0x4c] ss:$28 sps:$4 sm:$0xff]  }
 0x185   :  { %1998 = vmatprep.subr.bf16.mxu0 %v2990_v15  ;;  %v3024_v15 = vld [vmem:[%s4205_s7 + $0x48] ss:$28 sps:$4 sm:$0xff]  }
 0x188   :  { %1999 = vmatpush2.bf16.msra.mxu0 %v2988_v17  ;;  %v3031_v17 = vld [vmem:[%s4205_s7 + $0x14] ss:$28 sps:$4 sm:$0xff]  }
 0x189   :  { %2074 = vmatprep.subr.bf16.mxu0 %v2996_v19  ;;  %v3029_v19 = vld [vmem:[%s4205_s7 + $0x10] ss:$28 sps:$4 sm:$0xff]  }
 0x212   :  { %v2679_v24 = vpop.f32.mrf.mxu1 }
 0x214   :  { %v2680_v26 = vpop.f32.mrf.mxu1 }
 0x215   :  { %v2681_v27 = vadd.f32 %v2680_v26, %v2679_v24  ;;  %v1108_v24 = vrot.slane %v1103_v21, %v3693_v49  ;;  %v3036_v21 = vld [vmem:[%s4205_s7 + $0x35c] ss:$28 sps:$4 sm:$0xff]  }
 0x216   :  { %v2682_v28 = vpop.f32.mrf.mxu1 }
 0x217   :  { %v1079_v29 = vadd.f32 %v2681_v27, %v2496_v25 }
 0x218   :  { %v2683_v30 = vpop.f32.mrf.mxu1 }
 0x219   :  { %2176 = vst.msk [vmem:[#allocation2] sm:$0xff] %vm1155_vm1, %v1079_v29  ;;  %v2684_v31 = vadd.f32 %v2683_v30, %v2682_v28 }
 0x21a   :  { %v2685_v32 = vpop.f32.mrf.mxu1 }
 0x21b   :  { %v1082_v33 = vadd.f32 %v2684_v31, %v2496_v25 }
 0x21c   :  { %v2686_v34 = vpop.f32.mrf.mxu1 }
 0x21d   :  { %v1093_v37 = vpack.c.bf16 %v1082_v33, %v1079_v29  ;;  %2177 = vst.msk [vmem:[#allocation2 + $0x8] sm:$0xff] %vm1155_vm1, %v1082_v33  ;;  %v2687_v38 = vadd.f32 %v2686_v34, %v2685_v32 }
 0x21e   :  { %v2688_v35 = vpop.f32.mrf.mxu1 }
 0x21f   :  { %v1087_v42 = vadd.f32 %v2687_v38, %v2496_v25  ;;  %2521 = vmatmul.mubr.msk.bf16.vlgmr.msra.gmra.mxu1 %vm1155_vm1, %v1093_v37 }
 0x220   :  { %v2689_v45 = vpop.f32.mrf.mxu1  ;;  %1204 = vmatprep.mubr.bf16.mxu1 %v3192_v41  ;;  %2022 = vmatpush1.bf16.msra.mxu1 %v2901_v36 }
 0x221   :  { %2178 = vst.msk [vmem:[#allocation2 + $0x10] sm:$0xff] %vm1155_vm1, %v1087_v42  ;;  %v2690_v39 = vadd.f32 %v2689_v45, %v2688_v35  ;;  %2023 = vmatprep.subr.bf16.mxu1 %v2909_v40  ;;  %v2994_v35 = vld [vmem:[%s4205_s7 + $0x198] ss:$28 sps:$4 sm:$0xff]  }
 0x223   :  { %v1090_v50 = vadd.f32 %v2690_v39, %v2496_v25  ;;  %v3001_v39 = vld [vmem:[%s4205_s7 + $0x164] ss:$28 sps:$4 sm:$0xff]  }
 0x224   :  { %2024 = vmatpush1.bf16.msra.mxu1 %v2907_v46 }
 0x225   :  { %v1094_v41 = vpack.c.bf16 %v1090_v50, %v1087_v42  ;;  %2179 = vst.msk [vmem:[#allocation2 + $0x18] sm:$0xff] %vm1155_vm1, %v1090_v50  ;;  %2025 = vmatprep.subr.bf16.mxu1 %v2915_v48  ;;  %v2998_v42 = vld [vmem:[%s4205_s7 + $0x1a0] ss:$28 sps:$4 sm:$0xff]   ;;  %v3002_v48 = vld [vmem:[%s4205_s7 + $0x328] ss:$28 sps:$4 sm:$0xff]  }
 0x227   :  { %2522 = vmatmul.mubr.msk.bf16.gmra.mxu1 %vm1155_vm1, %v1094_v41 }
 0x228   :  { %2026 = vmatpush1.bf16.msra.mxu1 %v2913_v51 }
 0x229   :  { %2027 = vmatprep.subr.bf16.mxu1 %v2921_v43 }
 0x22c   :  { %2028 = vmatpush1.bf16.msra.mxu1 %v2919_v52 }
 0x22d   :  { %2029 = vmatprep.subr.bf16.mxu1 %v2927_v53  ;;  %v2999_v53 = vld [vmem:[%s4205_s7 + $0x160] ss:$28 sps:$4 sm:$0xff]  }
 0x230   :  { %2030 = vmatpush1.bf16.msra.mxu1 %v2925_v54  ;;  %v3003_v54 = vld [vmem:[%s4205_s7 + $0x168] ss:$28 sps:$4 sm:$0xff]  }
 0x231   :  { %2031 = vmatprep.subr.bf16.mxu1 %v2933_v55 }
 0x234   :  { %2032 = vmatpush1.bf16.msra.mxu1 %v2931_v56  ;;  %v3006_v56 = vld [vmem:[%s4205_s7 + $0x12c] ss:$28 sps:$4 sm:$0xff]  }
 0x235   :  { %2033 = vmatprep.subr.bf16.mxu1 %v2939_v57  ;;  %v3007_v57 = vld [vmem:[%s4205_s7 + $0x2f0] ss:$28 sps:$4 sm:$0xff]  }
 0x238   :  { %2034 = vmatpush1.bf16.msra.mxu1 %v2937_v58 }
 0x239   :  { %2035 = vmatprep.subr.bf16.mxu1 %v2945_v59 }
 0x23c   :  { %2036 = vmatpush1.bf16.msra.mxu1 %v2943_v60 }
 0x23d   :  { %2037 = vmatprep.subr.bf16.mxu1 %v2951_v61 }
 0x240   :  { %2038 = vmatpush2.bf16.msra.mxu1 %v2949_v62  ;;  %v3004_v62 = vld [vmem:[%s4205_s7 + $0x128] ss:$28 sps:$4 sm:$0xff]  }
 0x241   :  { %2039 = vmatprep.subr.bf16.mxu1 %v2957_v63  ;;  %v3008_v63 = vld [vmem:[%s4205_s7 + $0x130] ss:$28 sps:$4 sm:$0xff]  }
 0x244   :  { %2040 = vmatpush2.bf16.msra.mxu1 %v2955_v0 }
 0x245   :  { %2041 = vmatprep.subr.bf16.mxu1 %v2963_v1  ;;  %v3011_v1 = vld [vmem:[%s4205_s7 + $0xf4] ss:$28 sps:$4 sm:$0xff]  }
 0x248   :  { %2042 = vmatpush2.bf16.msra.mxu1 %v2961_v2  ;;  %v3012_v2 = vld [vmem:[%s4205_s7 + $0x2b8] ss:$28 sps:$4 sm:$0xff]  }
 0x249   :  { %2043 = vmatprep.subr.bf16.mxu1 %v2969_v3  ;;  %v3009_v3 = vld [vmem:[%s4205_s7 + $0xf0] ss:$28 sps:$4 sm:$0xff]  }
 0x24c   :  { %2044 = vmatpush2.bf16.msra.mxu1 %v2967_v4  ;;  %v3013_v4 = vld [vmem:[%s4205_s7 + $0xf8] ss:$28 sps:$4 sm:$0xff]  }
 0x24d   :  { %2045 = vmatprep.subr.bf16.mxu1 %v2975_v5  ;;  %v3016_v5 = vld [vmem:[%s4205_s7 + $0xbc] ss:$28 sps:$4 sm:$0xff]  }
 0x250   :  { %2046 = vmatpush2.bf16.msra.mxu1 %v2973_v6  ;;  %v3017_v6 = vld [vmem:[%s4205_s7 + $0x280] ss:$28 sps:$4 sm:$0xff]  }
 0x251   :  { %2047 = vmatprep.subr.bf16.mxu1 %v2981_v8  ;;  %v3018_v8 = vld [vmem:[%s4205_s7 + $0xc0] ss:$28 sps:$4 sm:$0xff]  }
 0x254   :  { %2048 = vmatpush2.bf16.msra.mxu1 %v2979_v10  ;;  %v3022_v10 = vld [vmem:[%s4205_s7 + $0x248] ss:$28 sps:$4 sm:$0xff]  }
 0x255   :  { %2049 = vmatprep.subr.bf16.mxu1 %v2987_v12  ;;  %v3023_v12 = vld [vmem:[%s4205_s7 + $0x88] ss:$28 sps:$4 sm:$0xff]  }
 0x258   :  { %2050 = vmatpush2.bf16.msra.mxu1 %v2985_v14  ;;  %v3027_v14 = vld [vmem:[%s4205_s7 + $0x210] ss:$28 sps:$4 sm:$0xff]  }
 0x259   :  { %2051 = vmatprep.subr.bf16.mxu1 %v2993_v16  ;;  %v3028_v16 = vld [vmem:[%s4205_s7 + $0x50] ss:$28 sps:$4 sm:$0xff]  }
 0x25c   :  { %2052 = vmatpush2.bf16.msra.mxu1 %v2991_v18  ;;  %v3032_v18 = vld [vmem:[%s4205_s7 + $0x1d8] ss:$28 sps:$4 sm:$0xff]  }
 0x25d   :  { %2691 = vmatprep.subr.bf16.mxu1 %v2997_v20  ;;  %v3033_v20 = vld [vmem:[%s4205_s7 + $0x18] ss:$28 sps:$4 sm:$0xff]  }
 0x2df   :  { %v1196_v22 = vpop.f32.mrf.mxu1 }
 0x2e0   :  { %v1197_v29 = vadd.f32 %v1196_v22, %v1108_v24  ;;  %v3034_v22 = vld [vmem:[%s4205_s7 + $0x358] ss:$28 sps:$4 sm:$0xff]  }
 0x2e1   :  { %v1198_v25 = vpop.f32.mrf.mxu1 }
 0x2e2   :  { %v1199_v27 = vadd.f32 %v1198_v25, %v1112_v23  ;;  %v1215_v37 = vmax.f32 %v1197_v29, 0.0  ;;  %v3042_v25 = vld [vmem:[%s4205_s7 + $0x2ec] ss:$28 sps:$4 sm:$0xff]   ;;  %v3048_v29 = vld [vmem:[%s4205_s7 + $0x27c] ss:$28 sps:$4 sm:$0xff]  }
 0x2e3   :  { %v1200_v26 = vpop.f32.mrf.mxu1 }
 0x2e4   :  { %v1201_v28 = vadd.f32 %v1200_v26, %v1108_v24  ;;  %v1216_v34 = vmax.f32 %v1199_v27, 0.0  ;;  %v3040_v26 = vld [vmem:[%s4205_s7 + $0x2e8] ss:$28 sps:$4 sm:$0xff]   ;;  %v3045_v27 = vld [vmem:[%s4205_s7 + $0x2b4] ss:$28 sps:$4 sm:$0xff]  }
 0x2e5   :  { %v1202_v30 = vpop.f32.mrf.mxu1 }
 0x2e6   :  { %v1203_v31 = vadd.f32 %v1202_v30, %v1112_v23  ;;  %v1217_v32 = vmax.f32 %v1201_v28, 0.0  ;;  %v3043_v28 = vld [vmem:[%s4205_s7 + $0x2b0] ss:$28 sps:$4 sm:$0xff]   ;;  %v3046_v30 = vld [vmem:[%s4205_s7 + $0x278] ss:$28 sps:$4 sm:$0xff]  }
 0x2e7   :  { %v1206_v33 = vpop.f32.mrf.mxu1 }
 0x2e8   :  { %v1218_v36 = vmax.f32 %v1203_v31, 0.0  ;;  %v3938_v45 = vpack.c.bf16 %v1217_v32, %v1215_v37  ;;  %v1207_v41 = vadd.f32 %v1206_v33, %v1108_v24  ;;  %v3051_v31 = vld [vmem:[%s4205_s7 + $0x244] ss:$28 sps:$4 sm:$0xff]   ;;  %v3054_v33 = vld [vmem:[%s4205_s7 + $0x20c] ss:$28 sps:$4 sm:$0xff]  }
 0x2e9   :  { %v1208_v38 = vpop.f32.mrf.mxu1  ;;  %v3049_v32 = vld [vmem:[%s4205_s7 + $0x240] ss:$28 sps:$4 sm:$0xff]   ;;  %v3055_v37 = vld [vmem:[%s4205_s7 + $0x1d0] ss:$28 sps:$4 sm:$0xff]  }
 0x2ea   :  { %v1224_v40 = vpack.c.bf16 %v1218_v36, %v1216_v34  ;;  %v1209_v50 = vadd.f32 %v1208_v38, %v1112_v23  ;;  %v1219_v60 = vmax.f32 %v1207_v41, 0.0  ;;  %v3052_v34 = vld [vmem:[%s4205_s7 + $0x208] ss:$28 sps:$4 sm:$0xff]   ;;  %v3057_v36 = vld [vmem:[%s4205_s7 + $0x1d4] ss:$28 sps:$4 sm:$0xff]  }
 0x2eb   :  { %v1210_v46 = vpop.f32.mrf.mxu1 }
 0x2ec   :  { %v1211_v51 = vadd.f32 %v1210_v46, %v1108_v24  ;;  %2000 = vmatprep.mubr.bf16.mxu0 %v1224_v40  ;;  %2053 = vmatprep.mubr.bf16.mxu1 %v1224_v40  ;;  %v1220_v58 = vmax.f32 %v1209_v50, 0.0  ;;  %v3037_v24 = vld [vmem:[%s4205_s7 + $0x320] ss:$28 sps:$4 sm:$0xff]  }
 0x2ed   :  { %v1212_v43 = vpop.f32.mrf.mxu1  ;;  %2001 = vmatmul.mubr.bf16.vlgmr.msra.gmra.mxu0 %v3938_v45  ;;  %2054 = vmatmul.mubr.bf16.vlgmr.msra.gmra.mxu1 %v3938_v45 }
 0x2ee   :  { %v1213_v52 = vadd.f32 %v1212_v43, %v1112_v23  ;;  %2075 = vmatpush1.bf16.msra.mxu0 %v2994_v35  ;;  %2692 = vmatpush3.bf16.msra.mxu1 %v2998_v42  ;;  %v1221_v55 = vmax.f32 %v1211_v51, 0.0  ;;  %v3039_v23 = vld [vmem:[%s4205_s7 + $0x324] ss:$28 sps:$4 sm:$0xff]  }
 0x2ef   :  { %2076 = vmatprep.subr.bf16.mxu0 %v3001_v39  ;;  %2693 = vmatprep.subr.bf16.mxu1 %v3002_v48 }
 0x2f0   :  { %v1222_v59 = vmax.f32 %v1213_v52, 0.0  ;;  %v3968_v0 = vpack.c.bf16 %v1221_v55, %v1219_v60 }
 0x2f2   :  { %v3960_v61 = vpack.c.bf16 %v1222_v59, %v1220_v58  ;;  %2077 = vmatpush1.bf16.msra.mxu0 %v2999_v53  ;;  %2694 = vmatpush3.bf16.msra.mxu1 %v3003_v54 }
 0x2f3   :  { %2078 = vmatprep.subr.bf16.mxu0 %v3006_v56  ;;  %2695 = vmatprep.subr.bf16.mxu1 %v3007_v57 }
 0x2f4   :  { %2010 = vmatprep.mubr.bf16.mxu0 %v3960_v61  ;;  %2063 = vmatprep.mubr.bf16.mxu1 %v3960_v61 }
 0x2f5   :  { %2011 = vmatmul.mubr.bf16.gmra.mxu0 %v3968_v0  ;;  %2064 = vmatmul.mubr.bf16.gmra.mxu1 %v3968_v0 }
 0x2f6   :  { %2079 = vmatpush1.bf16.msra.mxu0 %v3004_v62  ;;  %2696 = vmatpush3.bf16.msra.mxu1 %v3008_v63 }
 0x2f7   :  { %2106 = vmatprep.mubr.bf16.mxu0 %v1224_v40  ;;  %2159 = vmatprep.mubr.bf16.mxu1 %v1224_v40 }
 0x2f8   :  { %2080 = vmatprep.subr.bf16.mxu0 %v3011_v1  ;;  %2697 = vmatprep.subr.bf16.mxu1 %v3012_v2 }
 0x2fa   :  { %2081 = vmatpush1.bf16.msra.mxu0 %v3009_v3  ;;  %2698 = vmatpush3.bf16.msra.mxu1 %v3013_v4 }
 0x2fb   :  { %2082 = vmatprep.subr.bf16.mxu0 %v3016_v5  ;;  %2699 = vmatprep.subr.bf16.mxu1 %v3017_v6 }
 0x2fe   :  { %2083 = vmatpush1.bf16.msra.mxu0 %v3014_v7  ;;  %2700 = vmatpush3.bf16.msra.mxu1 %v3018_v8 }
 0x2ff   :  { %2084 = vmatprep.subr.bf16.mxu0 %v3021_v9  ;;  %2701 = vmatprep.subr.bf16.mxu1 %v3022_v10 }
 0x302   :  { %2085 = vmatpush1.bf16.msra.mxu0 %v3019_v11  ;;  %2702 = vmatpush3.bf16.msra.mxu1 %v3023_v12 }
 0x303   :  { %2086 = vmatprep.subr.bf16.mxu0 %v3026_v13  ;;  %2703 = vmatprep.subr.bf16.mxu1 %v3027_v14 }
 0x306   :  { %2087 = vmatpush1.bf16.msra.mxu0 %v3024_v15  ;;  %2704 = vmatpush3.bf16.msra.mxu1 %v3028_v16 }
 0x307   :  { %2088 = vmatprep.subr.bf16.mxu0 %v3031_v17  ;;  %2705 = vmatprep.subr.bf16.mxu1 %v3032_v18 }
 0x30a   :  { %2089 = vmatpush1.bf16.msra.mxu0 %v3029_v19  ;;  %2706 = vmatpush3.bf16.msra.mxu1 %v3033_v20 }
 0x30b   :  { %2090 = vmatprep.subr.bf16.mxu0 %v3036_v21 }
 0x30d   :  { %2160 = vmatmul.mubr.bf16.vlgmr.msra.gmra.mxu1 %v3938_v45 }
 0x30e   :  { %2091 = vmatpush2.bf16.msra.mxu0 %v3034_v22  ;;  %2167 = vmatprep.mubr.bf16.mxu1 %v3960_v61 }
 0x30f   :  { %2092 = vmatprep.subr.bf16.mxu0 %v3039_v23 }
 0x312   :  { %2093 = vmatpush2.bf16.msra.mxu0 %v3037_v24 }
 0x313   :  { %2094 = vmatprep.subr.bf16.mxu0 %v3042_v25 }
 0x315   :  { %2168 = vmatmul.mubr.bf16.gmra.mxu1 %v3968_v0 }
 0x316   :  { %2095 = vmatpush2.bf16.msra.mxu0 %v3040_v26 }
 0x317   :  { %2096 = vmatprep.subr.bf16.mxu0 %v3045_v27 }
 0x31a   :  { %2097 = vmatpush2.bf16.msra.mxu0 %v3043_v28 }
 0x31b   :  { %2098 = vmatprep.subr.bf16.mxu0 %v3048_v29 }
 0x31e   :  { %2099 = vmatpush2.bf16.msra.mxu0 %v3046_v30 }
 0x31f   :  { %2100 = vmatprep.subr.bf16.mxu0 %v3051_v31 }
 0x322   :  { %2101 = vmatpush2.bf16.msra.mxu0 %v3049_v32 }
 0x323   :  { %2102 = vmatprep.subr.bf16.mxu0 %v3054_v33 }
 0x326   :  { %2103 = vmatpush2.bf16.msra.mxu0 %v3052_v34 }
 0x327   :  { %2104 = vmatprep.subr.bf16.mxu0 %v3057_v36 }
 0x32a   :  { %2105 = vmatpush2.bf16.msra.mxu0 %v3055_v37 }
 0x32d   :  { %2107 = vmatmul.mubr.bf16.vlgmr.msra.gmra.mxu0 %v3938_v45 }
 0x32e   :  { %2116 = vmatprep.mubr.bf16.mxu0 %v3960_v61 }
 0x335   :  { %2117 = vmatmul.mubr.bf16.gmra.mxu0 %v3968_v0 }
 0x336   :  { %3181 = shalt.err (!%p3178_p4)
}
 0x337   :  { %s3194_s23 = smov 128   ;;  %s3195_s7 = smov 8   ;;  %v1367_v38 = vsub.s32 2, %v3684_v44  ;;  %v4095_v40 = vld [vmem:[%s4206_s8] sm:$0x7f]  ;;  %v1371_v35 = vsub.s32 3, %v3684_v44 }
 0x338   :  { %2389 = dma.vmem_to_hbm [thread:$0]  %s2384_s21, 512, %s4208_s10, [#allocation3], %s3194_s23, %s3194_s23, %s3195_s7   ;;  %v1360_v42 = vrot.slane %v4095_v40, %v3693_v49  ;;  %v1364_v46 = vrot.slane %v4095_v40, %v3687_v47 }
 0x339   :  { %v1368_v45 = vrot.slane %v4095_v40, %v1367_v38  ;;  %v1372_v39 = vrot.slane %v4095_v40, %v1371_v35 }
 0x3ad   :  { %v2002_v48 = vpop.f32.mrf.mxu0  ;;  %v2055_v50 = vpop.f32.mrf.mxu1 }
 0x3ae   :  { %v2003_v51 = vadd.f32 %v2002_v48, %v1360_v42  ;;  %v2056_v41 = vadd.f32 %v2055_v50, %v1368_v45 }
 0x3af   :  { %v2004_v43 = vpop.f32.mrf.mxu0  ;;  %v2057_v52 = vpop.f32.mrf.mxu1 }
 0x3b0   :  { %v2635_v53 = vmul.f32 -1.442695, %v2003_v51  ;;  %v2637_v54 = vmul.f32 -1.442695, %v2056_v41  ;;  %v2005_v55 = vadd.f32 %v2004_v43, %v1364_v46  ;;  %v2058_v56 = vadd.f32 %v2057_v52, %v1372_v39 }
 0x3b1   :  { %v2006_v57 = vpop.f32.mrf.mxu0  ;;  %v2059_v58 = vpop.f32.mrf.mxu1 }
 0x3b2   :  { %3058 = vpow2.f32 %v2635_v53  ;;  %v2636_v49 = vmul.f32 -1.442695, %v2005_v55  ;;  %v2638_v59 = vmul.f32 -1.442695, %v2058_v56  ;;  %v2007_v60 = vadd.f32 %v2006_v57, %v1360_v42 }
 0x3b3   :  { %3060 = vpow2.f32 %v2637_v54  ;;  %v2060_v47 = vadd.f32 %v2059_v58, %v1368_v45  ;;  %v2008_v61 = vpop.f32.mrf.mxu0  ;;  %v2061_v62 = vpop.f32.mrf.mxu1  ;;  %v1383_v56 = vsub.s32 6, %v3684_v44 }
 0x3b4   :  { %3062 = vpow2.f32 %v2636_v49  ;;  %v2642_v63 = vmul.f32 -1.442695, %v2007_v60  ;;  %v2009_v0 = vadd.f32 %v2008_v61, %v1364_v46  ;;  %v2062_v1 = vadd.f32 %v2061_v62, %v1372_v39 }
 0x3b5   :  { %3064 = vpow2.f32 %v2638_v59  ;;  %v2644_v2 = vmul.f32 -1.442695, %v2060_v47  ;;  %v2012_v3 = vpop.f32.mrf.mxu0  ;;  %v2065_v4 = vpop.f32.mrf.mxu1 }
 0x3b6   :  { %3066 = vpow2.f32 %v2642_v63  ;;  %v2643_v5 = vmul.f32 -1.442695, %v2009_v0  ;;  %v2645_v6 = vmul.f32 -1.442695, %v2062_v1  ;;  %v2013_v7 = vadd.f32 %v2012_v3, %v1360_v42 }
 0x3b7   :  { %3068 = vpow2.f32 %v2644_v2  ;;  %v2066_v8 = vadd.f32 %v2065_v4, %v1368_v45  ;;  %v2014_v9 = vpop.f32.mrf.mxu0  ;;  %v2067_v10 = vpop.f32.mrf.mxu1  ;;  %v1384_v0 = vrot.slane %v4095_v40, %v1383_v56 }
 0x3b8   :  { %3070 = vpow2.f32 %v2643_v5  ;;  %v2649_v11 = vmul.f32 -1.442695, %v2013_v7  ;;  %v2015_v12 = vadd.f32 %v2014_v9, %v1364_v46  ;;  %v2068_v13 = vadd.f32 %v2067_v10, %v1372_v39 }
 0x3b9   :  { %3072 = vpow2.f32 %v2645_v6  ;;  %v2651_v14 = vmul.f32 -1.442695, %v2066_v8  ;;  %v2016_v15 = vpop.f32.mrf.mxu0  ;;  %v2069_v16 = vpop.f32.mrf.mxu1 }
 0x3ba   :  { %3074 = vpow2.f32 %v2649_v11  ;;  %v2650_v17 = vmul.f32 -1.442695, %v2015_v12  ;;  %v2652_v18 = vmul.f32 -1.442695, %v2068_v13  ;;  %v2017_v19 = vadd.f32 %v2016_v15, %v1360_v42 }
 0x3bb   :  { %3076 = vpow2.f32 %v2651_v14  ;;  %v2070_v20 = vadd.f32 %v2069_v16, %v1368_v45  ;;  %v2018_v21 = vpop.f32.mrf.mxu0  ;;  %v2071_v22 = vpop.f32.mrf.mxu1 }
 0x3bc   :  { %3078 = vpow2.f32 %v2650_v17  ;;  %v2656_v23 = vmul.f32 -1.442695, %v2017_v19  ;;  %v2019_v24 = vadd.f32 %v2018_v21, %v1364_v46  ;;  %v2072_v25 = vadd.f32 %v2071_v22, %v1372_v39 }
 0x3bd   :  { %3080 = vpow2.f32 %v2652_v18  ;;  %v2658_v26 = vmul.f32 -1.442695, %v2070_v20 }
 0x3be   :  { %3082 = vpow2.f32 %v2656_v23  ;;  %v2657_v27 = vmul.f32 -1.442695, %v2019_v24  ;;  %v2659_v28 = vmul.f32 -1.442695, %v2072_v25 }
 0x3bf   :  { %v3059_v29 = vpop.eup %3058  ;;  %3084 = vpow2.f32 %v2658_v26 }
 0x3c0   :  { %v3061_v30 = vpop.eup %3060  ;;  %v2264_v31 = vadd.f32 1.0, %v3059_v29  ;;  %3086 = vpow2.f32 %v2657_v27 }
 0x3c1   :  { %v3063_v32 = vpop.eup %3062  ;;  %v2266_v33 = vadd.f32 1.0, %v3061_v30  ;;  %3088 = vpow2.f32 %v2659_v28 }
 0x3c2   :  { %v3065_v34 = vpop.eup %3064  ;;  %3090 = vrcp.f32 %v2264_v31  ;;  %v2265_v36 = vadd.f32 1.0, %v3063_v32 }
 0x3c3   :  { %v3067_v37 = vpop.eup %3066  ;;  %3092 = vrcp.f32 %v2266_v33  ;;  %v2267_v38 = vadd.f32 1.0, %v3065_v34 }
 0x3c4   :  { %v3069_v35 = vpop.eup %3068  ;;  %3094 = vrcp.f32 %v2265_v36  ;;  %v2271_v42 = vadd.f32 1.0, %v3067_v37 }
 0x3c5   :  { %v3071_v45 = vpop.eup %3070  ;;  %3096 = vrcp.f32 %v2267_v38  ;;  %v2273_v46 = vadd.f32 1.0, %v3069_v35 }
 0x3c6   :  { %v3073_v39 = vpop.eup %3072  ;;  %3098 = vrcp.f32 %v2271_v42  ;;  %v2272_v48 = vadd.f32 1.0, %v3071_v45  ;;  %v1375_v42 = vsub.s32 4, %v3684_v44 }
 0x3c7   :  { %v3075_v50 = vpop.eup %3074  ;;  %3100 = vrcp.f32 %v2273_v46  ;;  %v2274_v51 = vadd.f32 1.0, %v3073_v39  ;;  %v1379_v39 = vsub.s32 5, %v3684_v44 }
 0x3c8   :  { %v3077_v41 = vpop.eup %3076  ;;  %3102 = vrcp.f32 %v2272_v48  ;;  %v2278_v43 = vadd.f32 1.0, %v3075_v50  ;;  %v1376_v48 = vrot.slane %v4095_v40, %v1375_v42 }
 0x3c9   :  { %v3079_v52 = vpop.eup %3078  ;;  %3104 = vrcp.f32 %v2274_v51  ;;  %v2280_v53 = vadd.f32 1.0, %v3077_v41  ;;  %v1380_v41 = vrot.slane %v4095_v40, %v1379_v39 }
 0x3ca   :  { %v3081_v54 = vpop.eup %3080  ;;  %3106 = vrcp.f32 %v2278_v43  ;;  %v2279_v55 = vadd.f32 1.0, %v3079_v52 }
 0x3cb   :  { %v3083_v57 = vpop.eup %3082  ;;  %3108 = vrcp.f32 %v2280_v53  ;;  %v2281_v58 = vadd.f32 1.0, %v3081_v54 }
 0x3cc   :  { %v3085_v49 = vpop.eup %3084  ;;  %3110 = vrcp.f32 %v2279_v55  ;;  %v2285_v59 = vadd.f32 1.0, %v3083_v57 }
 0x3cd   :  { %v3087_v60 = vpop.eup %3086  ;;  %3112 = vrcp.f32 %v2281_v58  ;;  %v2287_v47 = vadd.f32 1.0, %v3085_v49  ;;  %v2707_v61 = vpop.f32.mrf.mxu1 }
 0x3ce   :  { %v3089_v62 = vpop.eup %3088  ;;  %3114 = vrcp.f32 %v2285_v59  ;;  %v2286_v63 = vadd.f32 1.0, %v3087_v60 }
 0x3cf   :  { %v3091_v1 = vpop.eup %3090  ;;  %3116 = vrcp.f32 %v2287_v47  ;;  %v2288_v2 = vadd.f32 1.0, %v3089_v62  ;;  %v2708_v3 = vpop.f32.mrf.mxu1 }
 0x3d0   :  { %v3093_v4 = vpop.eup %3092  ;;  %2348 = vst [vmem:[%s4207_s9] sm:$0xff] %v3091_v1  ;;  %3118 = vrcp.f32 %v2286_v63  ;;  %v2709_v5 = vadd.f32 %v2708_v3, %v2707_v61 }
 0x3d1   :  { %v3095_v6 = vpop.eup %3094  ;;  %2350 = vst [vmem:[%s4207_s9 + $0x10] sm:$0xff] %v3093_v4  ;;  %3120 = vrcp.f32 %v2288_v2  ;;  %v2710_v7 = vpop.f32.mrf.mxu1 }
 0x3d2   :  { %v3097_v8 = vpop.eup %3096  ;;  %2349 = vst [vmem:[%s4207_s9 + $0x8] sm:$0xff] %v3095_v6  ;;  %v2162_v9 = vadd.f32 %v2709_v5, %v1384_v0 }
 0x3d3   :  { %v3099_v10 = vpop.eup %3098  ;;  %2351 = vst [vmem:[%s4207_s9 + $0x18] sm:$0xff] %v3097_v8  ;;  %v2711_v11 = vpop.f32.mrf.mxu1 }
 0x3d4   :  { %v3101_v12 = vpop.eup %3100  ;;  %2355 = vst [vmem:[%s4207_s9 + $0x38] sm:$0xff] %v3099_v10  ;;  %v2641_v13 = vmul.f32 -1.442695, %v2162_v9  ;;  %v2712_v14 = vadd.f32 %v2711_v11, %v2710_v7 }
 0x3d5   :  { %v3103_v15 = vpop.eup %3102  ;;  %2357 = vst [vmem:[%s4207_s9 + $0x48] sm:$0xff] %v3101_v12  ;;  %v2713_v16 = vpop.f32.mrf.mxu1 }
 0x3d6   :  { %v3105_v17 = vpop.eup %3104  ;;  %2356 = vst [vmem:[%s4207_s9 + $0x40] sm:$0xff] %v3103_v15  ;;  %3122 = vpow2.f32 %v2641_v13  ;;  %v2165_v18 = vadd.f32 %v2712_v14, %v1384_v0 }
 0x3d7   :  { %v3107_v19 = vpop.eup %3106  ;;  %2358 = vst [vmem:[%s4207_s9 + $0x50] sm:$0xff] %v3105_v17  ;;  %v2714_v20 = vpop.f32.mrf.mxu1 }
 0x3d8   :  { %v3109_v21 = vpop.eup %3108  ;;  %2362 = vst [vmem:[%s4207_s9 + $0x70] sm:$0xff] %v3107_v19  ;;  %v2648_v22 = vmul.f32 -1.442695, %v2165_v18  ;;  %v2715_v23 = vadd.f32 %v2714_v20, %v2713_v16 }
 0x3d9   :  { %v3111_v24 = vpop.eup %3110  ;;  %2364 = vst [vmem:[%s4207_s9 + $0x80] sm:$0xff] %v3109_v21  ;;  %v2716_v25 = vpop.f32.mrf.mxu1 }
 0x3da   :  { %v3113_v26 = vpop.eup %3112  ;;  %2363 = vst [vmem:[%s4207_s9 + $0x78] sm:$0xff] %v3111_v24  ;;  %3124 = vpow2.f32 %v2648_v22  ;;  %v2170_v27 = vadd.f32 %v2715_v23, %v1384_v0 }
 0x3db   :  { %v3115_v28 = vpop.eup %3114  ;;  %2365 = vst [vmem:[%s4207_s9 + $0x88] sm:$0xff] %v3113_v26  ;;  %v2717_v29 = vpop.f32.mrf.mxu1 }
 0x3dc   :  { %v3117_v30 = vpop.eup %3116  ;;  %2369 = vst [vmem:[%s4207_s9 + $0xa8] sm:$0xff] %v3115_v28  ;;  %v2655_v31 = vmul.f32 -1.442695, %v2170_v27  ;;  %v2718_v32 = vadd.f32 %v2717_v29, %v2716_v25 }
 0x3dd   :  { %v3119_v33 = vpop.eup %3118  ;;  %2371 = vst [vmem:[%s4207_s9 + $0xb8] sm:$0xff] %v3117_v30 }
 0x3de   :  { %v3121_v34 = vpop.eup %3120  ;;  %2370 = vst [vmem:[%s4207_s9 + $0xb0] sm:$0xff] %v3119_v33  ;;  %3126 = vpow2.f32 %v2655_v31  ;;  %v2173_v36 = vadd.f32 %v2718_v32, %v1384_v0 }
 0x3df   :  { %2372 = vst [vmem:[%s4207_s9 + $0xc0] sm:$0xff] %v3121_v34 }
 0x3e0   :  { %v2662_v37 = vmul.f32 -1.442695, %v2173_v36 }
 0x3e2   :  { %3128 = vpow2.f32 %v2662_v37 }
 0x3e3   :  { %v3123_v38 = vpop.eup %3122 }
 0x3e4   :  { %v2270_v35 = vadd.f32 1.0, %v3123_v38 }
 0x3e6   :  { %3130 = vrcp.f32 %v2270_v35 }
 0x3e7   :  { %v3125_v45 = vpop.eup %3124 }
 0x3e8   :  { %v2277_v46 = vadd.f32 1.0, %v3125_v45 }
 0x3ea   :  { %3132 = vrcp.f32 %v2277_v46 }
 0x3eb   :  { %v3127_v50 = vpop.eup %3126 }
 0x3ec   :  { %v2284_v51 = vadd.f32 1.0, %v3127_v50 }
 0x3ed   :  { %v2108_v43 = vpop.f32.mrf.mxu0 }
 0x3ee   :  { %3134 = vrcp.f32 %v2284_v51  ;;  %v2109_v52 = vadd.f32 %v2108_v43, %v1376_v48 }
 0x3ef   :  { %v3129_v53 = vpop.eup %3128  ;;  %v2110_v54 = vpop.f32.mrf.mxu0 }
 0x3f0   :  { %v2291_v55 = vadd.f32 1.0, %v3129_v53  ;;  %v2639_v56 = vmul.f32 -1.442695, %v2109_v52  ;;  %v2111_v57 = vadd.f32 %v2110_v54, %v1380_v41 }
 0x3f1   :  { %v2112_v58 = vpop.f32.mrf.mxu0 }
 0x3f2   :  { %3136 = vrcp.f32 %v2291_v55  ;;  %v2640_v49 = vmul.f32 -1.442695, %v2111_v57  ;;  %v2113_v59 = vadd.f32 %v2112_v58, %v1376_v48 }
 0x3f3   :  { %v3131_v44 = vpop.eup %3130  ;;  %3138 = vpow2.f32 %v2639_v56  ;;  %v2114_v60 = vpop.f32.mrf.mxu0 }
 0x3f4   :  { %2354 = vst.msk [vmem:[%s4207_s9 + $0x30] sm:$0xff] %vm678_vm0, %v3131_v44  ;;  %3140 = vpow2.f32 %v2640_v49  ;;  %v2646_v40 = vmul.f32 -1.442695, %v2113_v59  ;;  %v2115_v47 = vadd.f32 %v2114_v60, %v1380_v41 }
 0x3f5   :  { %v2118_v61 = vpop.f32.mrf.mxu0 }
 0x3f6   :  { %3142 = vpow2.f32 %v2646_v40  ;;  %v2647_v62 = vmul.f32 -1.442695, %v2115_v47  ;;  %v2119_v63 = vadd.f32 %v2118_v61, %v1376_v48 }
 0x3f7   :  { %v3133_v0 = vpop.eup %3132  ;;  %v2120_v1 = vpop.f32.mrf.mxu0 }
 0x3f8   :  { %2361 = vst.msk [vmem:[%s4207_s9 + $0x68] sm:$0xff] %vm678_vm0, %v3133_v0  ;;  %3144 = vpow2.f32 %v2647_v62  ;;  %v2653_v2 = vmul.f32 -1.442695, %v2119_v63  ;;  %v2121_v3 = vadd.f32 %v2120_v1, %v1380_v41 }
 0x3f9   :  { %v2122_v4 = vpop.f32.mrf.mxu0 }
 0x3fa   :  { %3146 = vpow2.f32 %v2653_v2  ;;  %v2654_v5 = vmul.f32 -1.442695, %v2121_v3  ;;  %v2123_v6 = vadd.f32 %v2122_v4, %v1376_v48 }
 0x3fb   :  { %v3135_v7 = vpop.eup %3134  ;;  %v2124_v8 = vpop.f32.mrf.mxu0 }
 0x3fc   :  { %2368 = vst.msk [vmem:[%s4207_s9 + $0xa0] sm:$0xff] %vm678_vm0, %v3135_v7  ;;  %3148 = vpow2.f32 %v2654_v5  ;;  %v2660_v9 = vmul.f32 -1.442695, %v2123_v6  ;;  %v2125_v10 = vadd.f32 %v2124_v8, %v1380_v41 }
 0x3fe   :  { %3150 = vpow2.f32 %v2660_v9  ;;  %v2661_v11 = vmul.f32 -1.442695, %v2125_v10 }
 0x3ff   :  { %v3137_v12 = vpop.eup %3136 }
 0x400   :  { %v3139_v13 = vpop.eup %3138  ;;  %2375 = vst.msk [vmem:[%s4207_s9 + $0xd8] sm:$0xff] %vm678_vm0, %v3137_v12  ;;  %3152 = vpow2.f32 %v2661_v11 }
 0x401   :  { %v3141_v14 = vpop.eup %3140  ;;  %v2268_v15 = vadd.f32 1.0, %v3139_v13 }
 0x402   :  { %v2269_v16 = vadd.f32 1.0, %v3141_v14 }
 0x403   :  { %v3143_v17 = vpop.eup %3142  ;;  %3154 = vrcp.f32 %v2268_v15 }
 0x404   :  { %3156 = vrcp.f32 %v2269_v16  ;;  %v2275_v18 = vadd.f32 1.0, %v3143_v17 }
 0x405   :  { %v3145_v19 = vpop.eup %3144 }
 0x406   :  { %3158 = vrcp.f32 %v2275_v18  ;;  %v2276_v20 = vadd.f32 1.0, %v3145_v19 }
 0x407   :  { %v3147_v21 = vpop.eup %3146 }
 0x408   :  { %3160 = vrcp.f32 %v2276_v20  ;;  %v2282_v22 = vadd.f32 1.0, %v3147_v21 }
 0x409   :  { %v3149_v23 = vpop.eup %3148 }
 0x40a   :  { %3162 = vrcp.f32 %v2282_v22  ;;  %v2283_v24 = vadd.f32 1.0, %v3149_v23 }
 0x40b   :  { %v3151_v25 = vpop.eup %3150 }
 0x40c   :  { %3164 = vrcp.f32 %v2283_v24  ;;  %v2289_v26 = vadd.f32 1.0, %v3151_v25 }
 0x40d   :  { %v3153_v27 = vpop.eup %3152 }
 0x40e   :  { %3166 = vrcp.f32 %v2289_v26  ;;  %v2290_v28 = vadd.f32 1.0, %v3153_v27 }
 0x410   :  { %v3155_v29 = vpop.eup %3154  ;;  %3168 = vrcp.f32 %v2290_v28 }
 0x411   :  { %v3157_v30 = vpop.eup %3156  ;;  %2352 = vst [vmem:[%s4207_s9 + $0x20] sm:$0xff] %v3155_v29 }
 0x412   :  { %2353 = vst [vmem:[%s4207_s9 + $0x28] sm:$0xff] %v3157_v30 }
 0x413   :  { %v3159_v31 = vpop.eup %3158 }
 0x414   :  { %2359 = vst [vmem:[%s4207_s9 + $0x58] sm:$0xff] %v3159_v31 }
 0x415   :  { %v3161_v32 = vpop.eup %3160 }
 0x416   :  { %2360 = vst [vmem:[%s4207_s9 + $0x60] sm:$0xff] %v3161_v32 }
 0x417   :  { %v3163_v33 = vpop.eup %3162 }
 0x418   :  { %2366 = vst [vmem:[%s4207_s9 + $0x90] sm:$0xff] %v3163_v33 }
 0x419   :  { %v3165_v34 = vpop.eup %3164 }
 0x41a   :  { %2367 = vst [vmem:[%s4207_s9 + $0x98] sm:$0xff] %v3165_v34 }
 0x41b   :  { %v3167_v36 = vpop.eup %3166 }
 0x41c   :  { %2373 = vst [vmem:[%s4207_s9 + $0xc8] sm:$0xff] %v3167_v36 }
 0x41d   :  { %v3169_v37 = vpop.eup %3168 }
 0x41e   :  { %2374 = vst [vmem:[%s4207_s9 + $0xd0] sm:$0xff] %v3169_v37 }
 0x41f   :  { %3190 = dma.done.wait [#allocation3], 512  }
 0x420   :  { %3191 = vsyncadd [#allocation3], 4294966784 }
 0x421   :  { %2395 = vsyncpa [#allocation3], 1 }

</bundles_post_ra>
